<compile_context>
chip_gen: v7x
topology: tpu7x:2x2x1
jax: 0.10.0
libtpu: 0.0.40
codegen_flags: <defaults>
</compile_context>

<pallas_src>
import jax
import jax.numpy as jnp
from jax import lax
from jax.experimental import pallas as pl
from jax.experimental.pallas import tpu as pltpu


# ----------------------------- model hyper-params -----------------------------
VOCAB_SIZE = 32
EMBEDDING_DIM = 16
HIDDEN_SIZE = 32
PADDING_IDX = 0
INIT_IDX = 1
MAX_LEN = 8
BATCH = 2

GATES = 4 * HIDDEN_SIZE  # 128 lanes -> exactly one vreg wide

# packed-parameter row offsets (lane width = 4H = 128), all pre-scaled for the
# tanh-form sigmoid (i/f/o lane blocks carry 0.5 * pre-activation weights/biases)
ENC_TAB_OFF = 0     # (V, 4H) rows  0..31 : emb @ Wih_enc + b_enc
ENC_HW_OFF = 32     # (H, 4H) rows 32..63 : Whh_enc
DEC_TAB_OFF = 64    # (V, 4H) rows 64..95 : emb @ Wih_dec + b_dec
OUT_B_OFF = 96      # (1, V)  row  96, lanes 0..V-1 : out_b (NOT scaled)
TOTAL_ROWS = 104


# --------------------------------- kernel --------------------------------------
def seq2seq_kernel(tok_ref,    # (B, T)  int32 encoder token ids
                   p_ref,      # (TOTAL_ROWS, 4H) packed parameters
                   comb_ref,   # (H, 4H + V) combined RHS [Whh_dec | out_w]
                   out_ref):   # (B, T, V) greedy-decoder logits
    B, T, V = out_ref.shape
    H = HIDDEN_SIZE
    G = GATES

    # -------- hoisted parameter loads (resident across both unrolled loops) ----
    enc_tab = p_ref[ENC_TAB_OFF:ENC_TAB_OFF + V, :]      # (V, 4H)
    enc_hw = p_ref[ENC_HW_OFF:ENC_HW_OFF + H, :]         # (H, 4H)
    dec_tab = p_ref[DEC_TAB_OFF:DEC_TAB_OFF + V, :]      # (V, 4H)
    out_b = p_ref[OUT_B_OFF:OUT_B_OFF + 1, 0:V]          # (1, V)
    comb = comb_ref[...]                                  # (H, 4H + V)

    lane_v = lax.broadcasted_iota(jnp.int32, (B, V), 1)   # vocab-lane index
    tok = tok_ref[...]                                     # (B, T) int32

    def gate_nonlin(gates_s, c):
        # gates_s carries 0.5*preact on the i/f/o lanes (weights pre-scaled at pack
        # time) and the raw preact on the g lanes, so one 128-lane EUP tanh covers
        # all four gates:  sigmoid(x) == 0.5*tanh(0.5*x) + 0.5
        t = jnp.tanh(gates_s)
        i_g = 0.5 * t[:, 0:H] + 0.5
        f_g = 0.5 * t[:, H:2 * H] + 0.5
        g_g = t[:, 2 * H:3 * H]
        o_g = 0.5 * t[:, 3 * H:4 * H] + 0.5
        c_new = f_g * c + i_g * g_g
        h_new = o_g * jnp.tanh(c_new)
        return h_new, c_new

    # ------------------------------- encoder ----------------------------------
    h = jnp.zeros((B, H), jnp.float32)
    c = jnp.zeros((B, H), jnp.float32)
    for t in range(T):                                   # fully unrolled (T static)
        # embedding lookup + input projection as a one-hot matmul against the
        # pack-time table (independent of h -> off the serial h-chain)
        oh = (lane_v == tok[:, t:t + 1]).astype(jnp.float32)          # (B, V)
        x_proj = jnp.dot(oh, enc_tab, preferred_element_type=jnp.float32)
        gates = x_proj + jnp.dot(h, enc_hw, preferred_element_type=jnp.float32)
        h, c = gate_nonlin(gates, c)

    # --------------------------- greedy decoder -------------------------------
    c = jnp.zeros((B, H), jnp.float32)
    onehot = (lane_v == INIT_IDX).astype(jnp.float32)                 # <s> one-hot
    # z @ Whh_dec for step 0 (lane-tile-aligned slice of the combined RHS)
    h_whh = jnp.dot(h, comb[:, 0:G], preferred_element_type=jnp.float32)
    for t in range(T):                                   # fully unrolled
        gates = jnp.dot(onehot, dec_tab,
                        preferred_element_type=jnp.float32) + h_whh
        h, c = gate_nonlin(gates, c)
        # one MXU push serves both h consumers: next-step Whh term + vocab logits
        hp = jnp.dot(h, comb, preferred_element_type=jnp.float32)     # (B, 4H + V)
        h_whh = hp[:, 0:G]
        logits = hp[:, G:G + V] + out_b                               # (B, V)
        out_ref[:, t:t + 1, :] = logits[:, None, :]
        # greedy argmax carried as a one-hot mask (exact f32 tie would multi-hot;
        # probability ~0 with continuous random weights)
        m = jnp.max(logits, axis=1, keepdims=True)
        onehot = (logits == m).astype(jnp.float32)


# ----------------------------- parameter packing --------------------------------
def pack_params(params):
    """Fuse the 4 LSTM gates per matmul (lane order i,f,g,o), fold the embedding
    lookups and biases into one-hot tables, pre-scale i/f/o lanes by 0.5 for the
    tanh-form sigmoid, and pack into two small resident buffers."""
    V, E, H, G = VOCAB_SIZE, EMBEDDING_DIM, HIDDEN_SIZE, GATES

    def fuse(w):      # (4, in_dim, H) -> (in_dim, 4H)
        return jnp.transpose(w, (1, 0, 2)).reshape(w.shape[1], G)

    def fuse_b(b):    # (4, 1, H) -> (1, 4H)
        return jnp.transpose(b, (1, 0, 2)).reshape(1, G)

    # 0.5 on i/f/o lane blocks (exact power-of-two scale), 1.0 on g lanes
    gate_scale = jnp.concatenate(
        [jnp.full((1, 2 * H), 0.5, jnp.float32),
         jnp.ones((1, H), jnp.float32),
         jnp.full((1, H), 0.5, jnp.float32)], axis=1)

    emb = params["emb"]
    enc_tab = (jnp.dot(emb, fuse(params["enc_wih"])) +
               fuse_b(params["enc_b"])) * gate_scale                 # (V, 4H)
    enc_hw = fuse(params["enc_whh"]) * gate_scale                    # (H, 4H)
    dec_tab = (jnp.dot(emb, fuse(params["dec_wih"])) +
               fuse_b(params["dec_b"])) * gate_scale                 # (V, 4H)
    dec_hw = fuse(params["dec_whh"]) * gate_scale                    # (H, 4H)

    packed = jnp.zeros((TOTAL_ROWS, G), jnp.float32)
    packed = packed.at[ENC_TAB_OFF:ENC_TAB_OFF + V, :].set(enc_tab)
    packed = packed.at[ENC_HW_OFF:ENC_HW_OFF + H, :].set(enc_hw)
    packed = packed.at[DEC_TAB_OFF:DEC_TAB_OFF + V, :].set(dec_tab)
    packed = packed.at[OUT_B_OFF:OUT_B_OFF + 1, :V].set(params["out_b"])

    # combined RHS for the per-step h matmul: [Whh_dec | out_w]  (H, 4H + V)
    comb = jnp.concatenate([dec_hw, params["out_w"]], axis=1)
    return packed, comb


# --------------------------------- wrapper --------------------------------------
@jax.jit
def seq2seq_forward(inputs, packed, comb):
    """inputs: (B, T) int32 token indices. Returns (B, T, V) float32 logits."""
    B, T = inputs.shape
    vmem = pl.BlockSpec(memory_space=pltpu.MemorySpace.VMEM)
    return pl.pallas_call(
        seq2seq_kernel,
        out_shape=jax.ShapeDtypeStruct((B, T, VOCAB_SIZE), jnp.float32),
        in_specs=[vmem, vmem, vmem],
        out_specs=vmem,
    )(inputs, packed, comb)


# --------------------------- pure-JAX reference ----------------------------------
def reference_forward(inputs, params):
    B, T = inputs.shape
    H = HIDDEN_SIZE

    def lstm_step(x_t, h, c, wih, whh, b):
        def gate(k):
            return x_t @ wih[k] + h @ whh[k] + b[k]
        i = jax.nn.sigmoid(gate(0))
        f = jax.nn.sigmoid(gate(1))
        g = jnp.tanh(gate(2))
        o = jax.nn.sigmoid(gate(3))
        c_new = f * c + i * g
        return o * jnp.tanh(c_new), c_new

    emb = params["emb"]
    x_emb = emb[inputs]                                          # (B, T, E)
    h = jnp.zeros((B, H), jnp.float32)
    c = jnp.zeros((B, H), jnp.float32)
    for t in range(T):
        h, c = lstm_step(x_emb[:, t], h, c,
                         params["enc_wih"], params["enc_whh"], params["enc_b"])
    z = h

    h, c = z, jnp.zeros((B, H), jnp.float32)
    tok = jnp.full((B,), INIT_IDX, jnp.int32)
    outs = []
    for t in range(T):
        x_t = emb[tok]
        h, c = lstm_step(x_t, h, c,
                         params["dec_wih"], params["dec_whh"], params["dec_b"])
        logits = h @ params["out_w"] + params["out_b"]
        outs.append(logits)
        tok = jnp.argmax(logits, axis=1).astype(jnp.int32)
    return jnp.stack(outs, axis=1)                               # (B, T, V)


# ------------------------------ param init ---------------------------------------
def init_params(key):
    V, E, H = VOCAB_SIZE, EMBEDDING_DIM, HIDDEN_SIZE
    ks = jax.random.split(key, 10)
    s = 1.0 / jnp.sqrt(H)
    emb = jax.random.normal(ks[0], (V, E), jnp.float32) * 0.1
    emb = emb.at[PADDING_IDX].set(0.0)                           # padding_idx row is zero
    params = {
        "emb": emb,
        "enc_wih": jax.random.uniform(ks[1], (4, E, H), jnp.float32, -s, s),
        "enc_whh": jax.random.uniform(ks[2], (4, H, H), jnp.float32, -s, s),
        "enc_b":   jax.random.uniform(ks[3], (4, 1, H), jnp.float32, -s, s),
        "dec_wih": jax.random.uniform(ks[4], (4, E, H), jnp.float32, -s, s),
        "dec_whh": jax.random.uniform(ks[5], (4, H, H), jnp.float32, -s, s),
        "dec_b":   jax.random.uniform(ks[6], (4, 1, H), jnp.float32, -s, s),
        "out_w":   jax.random.uniform(ks[7], (H, V), jnp.float32, -s, s),
        "out_b":   jax.random.uniform(ks[8], (1, V), jnp.float32, -s, s),
    }
    return params


if __name__ == "__main__":
    key = jax.random.PRNGKey(0)
    pkey, ikey = jax.random.split(key)
    params = init_params(pkey)
    packed, comb = pack_params(params)                           # one-time fusion/pack

    # deterministic example input: (batch=2, max_len=8) token indices
    inputs = jax.random.randint(ikey, (BATCH, MAX_LEN), 0, VOCAB_SIZE, jnp.int32)

    out = seq2seq_forward(inputs, packed, comb)
    out = jax.block_until_ready(out)

    assert out.shape == (BATCH, MAX_LEN, VOCAB_SIZE), out.shape
    assert out.dtype == jnp.float32
    assert bool(jnp.all(jnp.isfinite(out)))

    ref = reference_forward(inputs, params)
    assert bool(jnp.allclose(out, ref, rtol=1e-3, atol=1e-3)), (
        f"max abs err {float(jnp.max(jnp.abs(out - ref)))}")

    print("KERNEL_OK")
</pallas_src>

<mosaic_0001>
module attributes {stable_mosaic.version = 11 : i64} {
  func.func @seq2seq_kernel(%arg0: memref<2x8xi32, #tpu.memory_space<vmem>>, %arg1: memref<104x128xf32, #tpu.memory_space<vmem>>, %arg2: memref<32x160xf32, #tpu.memory_space<vmem>>, %arg3: memref<2x8x32xf32, #tpu.memory_space<vmem>>) attributes {dimension_semantics = [], scalar_prefetch = 0 : i64, scratch_operands = 0 : i64, tpu.core_type = #tpu.core_type<tc>} {
    %c0 = arith.constant 0 : index
    %c0_0 = arith.constant 0 : index
    %0 = vector.load %arg1[%c0, %c0_0] : memref<104x128xf32, #tpu.memory_space<vmem>>, vector<32x128xf32>
    %c32 = arith.constant 32 : index
    %c0_1 = arith.constant 0 : index
    %1 = vector.load %arg1[%c32, %c0_1] : memref<104x128xf32, #tpu.memory_space<vmem>>, vector<32x128xf32>
    %c64 = arith.constant 64 : index
    %c0_2 = arith.constant 0 : index
    %2 = vector.load %arg1[%c64, %c0_2] : memref<104x128xf32, #tpu.memory_space<vmem>>, vector<32x128xf32>
    %c96 = arith.constant 96 : index
    %c0_3 = arith.constant 0 : index
    %3 = vector.load %arg1[%c96, %c0_3] : memref<104x128xf32, #tpu.memory_space<vmem>>, vector<1x32xf32>
    %c0_4 = arith.constant 0 : index
    %c0_5 = arith.constant 0 : index
    %4 = vector.load %arg2[%c0_4, %c0_5] : memref<32x160xf32, #tpu.memory_space<vmem>>, vector<32x160xf32>
    %5 = tpu.iota {dimensions = array<i32: 1>} : vector<2x32xi32>
    %c0_6 = arith.constant 0 : index
    %c0_7 = arith.constant 0 : index
    %6 = vector.load %arg0[%c0_6, %c0_7] : memref<2x8xi32, #tpu.memory_space<vmem>>, vector<2x8xi32>
    %cst = arith.constant 0.000000e+00 : f32
    %7 = vector.broadcast %cst : f32 to vector<2x32xf32>
    %cst_8 = arith.constant 0.000000e+00 : f32
    %8 = vector.broadcast %cst_8 : f32 to vector<2x32xf32>
    %9 = vector.extract_strided_slice %6 {offsets = [0, 0], sizes = [2, 1], strides = [1, 1]} : vector<2x8xi32> to vector<2x1xi32>
    %10 = vector.broadcast %9 : vector<2x1xi32> to vector<2x32xi32>
    %11 = arith.cmpi eq, %5, %10 : vector<2x32xi32>
    %12 = arith.extui %11 : vector<2x32xi1> to vector<2x32xi32>
    %13 = arith.sitofp %12 : vector<2x32xi32> to vector<2x32xf32>
    %cst_9 = arith.constant dense<0.000000e+00> : vector<2x128xf32>
    %14 = tpu.matmul %13, %0, %cst_9 {dimension_numbers = #tpu.dot_dimension_numbers<[1], [0], [0], [1], [0, 0, 1, 1], [], []>} : vector<2x32xf32>, vector<32x128xf32>, vector<2x128xf32> -> vector<2x128xf32>
    %cst_10 = arith.constant dense<0.000000e+00> : vector<2x128xf32>
    %15 = tpu.matmul %7, %1, %cst_10 {dimension_numbers = #tpu.dot_dimension_numbers<[1], [0], [0], [1], [0, 0, 1, 1], [], []>} : vector<2x32xf32>, vector<32x128xf32>, vector<2x128xf32> -> vector<2x128xf32>
    %16 = arith.addf %14, %15 : vector<2x128xf32>
    %17 = math.tanh %16 : vector<2x128xf32>
    %18 = vector.extract_strided_slice %17 {offsets = [0, 0], sizes = [2, 32], strides = [1, 1]} : vector<2x128xf32> to vector<2x32xf32>
    %cst_11 = arith.constant 5.000000e-01 : f32
    %19 = vector.broadcast %cst_11 : f32 to vector<2x32xf32>
    %20 = arith.mulf %19, %18 : vector<2x32xf32>
    %cst_12 = arith.constant 5.000000e-01 : f32
    %21 = vector.broadcast %cst_12 : f32 to vector<2x32xf32>
    %22 = arith.addf %20, %21 : vector<2x32xf32>
    %23 = vector.extract_strided_slice %17 {offsets = [0, 32], sizes = [2, 32], strides = [1, 1]} : vector<2x128xf32> to vector<2x32xf32>
    %cst_13 = arith.constant 5.000000e-01 : f32
    %24 = vector.broadcast %cst_13 : f32 to vector<2x32xf32>
    %25 = arith.mulf %24, %23 : vector<2x32xf32>
    %cst_14 = arith.constant 5.000000e-01 : f32
    %26 = vector.broadcast %cst_14 : f32 to vector<2x32xf32>
    %27 = arith.addf %25, %26 : vector<2x32xf32>
    %28 = vector.extract_strided_slice %17 {offsets = [0, 64], sizes = [2, 32], strides = [1, 1]} : vector<2x128xf32> to vector<2x32xf32>
    %29 = vector.extract_strided_slice %17 {offsets = [0, 96], sizes = [2, 32], strides = [1, 1]} : vector<2x128xf32> to vector<2x32xf32>
    %cst_15 = arith.constant 5.000000e-01 : f32
    %30 = vector.broadcast %cst_15 : f32 to vector<2x32xf32>
    %31 = arith.mulf %30, %29 : vector<2x32xf32>
    %cst_16 = arith.constant 5.000000e-01 : f32
    %32 = vector.broadcast %cst_16 : f32 to vector<2x32xf32>
    %33 = arith.addf %31, %32 : vector<2x32xf32>
    %34 = arith.mulf %27, %8 : vector<2x32xf32>
    %35 = arith.mulf %22, %28 : vector<2x32xf32>
    %36 = arith.addf %34, %35 : vector<2x32xf32>
    %37 = math.tanh %36 : vector<2x32xf32>
    %38 = arith.mulf %33, %37 : vector<2x32xf32>
    %39 = vector.extract_strided_slice %6 {offsets = [0, 1], sizes = [2, 1], strides = [1, 1]} : vector<2x8xi32> to vector<2x1xi32>
    %40 = vector.broadcast %39 : vector<2x1xi32> to vector<2x32xi32>
    %41 = arith.cmpi eq, %5, %40 : vector<2x32xi32>
    %42 = arith.extui %41 : vector<2x32xi1> to vector<2x32xi32>
    %43 = arith.sitofp %42 : vector<2x32xi32> to vector<2x32xf32>
    %cst_17 = arith.constant dense<0.000000e+00> : vector<2x128xf32>
    %44 = tpu.matmul %43, %0, %cst_17 {dimension_numbers = #tpu.dot_dimension_numbers<[1], [0], [0], [1], [0, 0, 1, 1], [], []>} : vector<2x32xf32>, vector<32x128xf32>, vector<2x128xf32> -> vector<2x128xf32>
    %cst_18 = arith.constant dense<0.000000e+00> : vector<2x128xf32>
    %45 = tpu.matmul %38, %1, %cst_18 {dimension_numbers = #tpu.dot_dimension_numbers<[1], [0], [0], [1], [0, 0, 1, 1], [], []>} : vector<2x32xf32>, vector<32x128xf32>, vector<2x128xf32> -> vector<2x128xf32>
    %46 = arith.addf %44, %45 : vector<2x128xf32>
    %47 = math.tanh %46 : vector<2x128xf32>
    %48 = vector.extract_strided_slice %47 {offsets = [0, 0], sizes = [2, 32], strides = [1, 1]} : vector<2x128xf32> to vector<2x32xf32>
    %cst_19 = arith.constant 5.000000e-01 : f32
    %49 = vector.broadcast %cst_19 : f32 to vector<2x32xf32>
    %50 = arith.mulf %49, %48 : vector<2x32xf32>
    %cst_20 = arith.constant 5.000000e-01 : f32
    %51 = vector.broadcast %cst_20 : f32 to vector<2x32xf32>
    %52 = arith.addf %50, %51 : vector<2x32xf32>
    %53 = vector.extract_strided_slice %47 {offsets = [0, 32], sizes = [2, 32], strides = [1, 1]} : vector<2x128xf32> to vector<2x32xf32>
    %cst_21 = arith.constant 5.000000e-01 : f32
    %54 = vector.broadcast %cst_21 : f32 to vector<2x32xf32>
    %55 = arith.mulf %54, %53 : vector<2x32xf32>
    %cst_22 = arith.constant 5.000000e-01 : f32
    %56 = vector.broadcast %cst_22 : f32 to vector<2x32xf32>
    %57 = arith.addf %55, %56 : vector<2x32xf32>
    %58 = vector.extract_strided_slice %47 {offsets = [0, 64], sizes = [2, 32], strides = [1, 1]} : vector<2x128xf32> to vector<2x32xf32>
    %59 = vector.extract_strided_slice %47 {offsets = [0, 96], sizes = [2, 32], strides = [1, 1]} : vector<2x128xf32> to vector<2x32xf32>
    %cst_23 = arith.constant 5.000000e-01 : f32
    %60 = vector.broadcast %cst_23 : f32 to vector<2x32xf32>
    %61 = arith.mulf %60, %59 : vector<2x32xf32>
    %cst_24 = arith.constant 5.000000e-01 : f32
    %62 = vector.broadcast %cst_24 : f32 to vector<2x32xf32>
    %63 = arith.addf %61, %62 : vector<2x32xf32>
    %64 = arith.mulf %57, %36 : vector<2x32xf32>
    %65 = arith.mulf %52, %58 : vector<2x32xf32>
    %66 = arith.addf %64, %65 : vector<2x32xf32>
    %67 = math.tanh %66 : vector<2x32xf32>
    %68 = arith.mulf %63, %67 : vector<2x32xf32>
    %69 = vector.extract_strided_slice %6 {offsets = [0, 2], sizes = [2, 1], strides = [1, 1]} : vector<2x8xi32> to vector<2x1xi32>
    %70 = vector.broadcast %69 : vector<2x1xi32> to vector<2x32xi32>
    %71 = arith.cmpi eq, %5, %70 : vector<2x32xi32>
    %72 = arith.extui %71 : vector<2x32xi1> to vector<2x32xi32>
    %73 = arith.sitofp %72 : vector<2x32xi32> to vector<2x32xf32>
    %cst_25 = arith.constant dense<0.000000e+00> : vector<2x128xf32>
    %74 = tpu.matmul %73, %0, %cst_25 {dimension_numbers = #tpu.dot_dimension_numbers<[1], [0], [0], [1], [0, 0, 1, 1], [], []>} : vector<2x32xf32>, vector<32x128xf32>, vector<2x128xf32> -> vector<2x128xf32>
    %cst_26 = arith.constant dense<0.000000e+00> : vector<2x128xf32>
    %75 = tpu.matmul %68, %1, %cst_26 {dimension_numbers = #tpu.dot_dimension_numbers<[1], [0], [0], [1], [0, 0, 1, 1], [], []>} : vector<2x32xf32>, vector<32x128xf32>, vector<2x128xf32> -> vector<2x128xf32>
    %76 = arith.addf %74, %75 : vector<2x128xf32>
    %77 = math.tanh %76 : vector<2x128xf32>
    %78 = vector.extract_strided_slice %77 {offsets = [0, 0], sizes = [2, 32], strides = [1, 1]} : vector<2x128xf32> to vector<2x32xf32>
    %cst_27 = arith.constant 5.000000e-01 : f32
    %79 = vector.broadcast %cst_27 : f32 to vector<2x32xf32>
    %80 = arith.mulf %79, %78 : vector<2x32xf32>
    %cst_28 = arith.constant 5.000000e-01 : f32
    %81 = vector.broadcast %cst_28 : f32 to vector<2x32xf32>
    %82 = arith.addf %80, %81 : vector<2x32xf32>
    %83 = vector.extract_strided_slice %77 {offsets = [0, 32], sizes = [2, 32], strides = [1, 1]} : vector<2x128xf32> to vector<2x32xf32>
    %cst_29 = arith.constant 5.000000e-01 : f32
    %84 = vector.broadcast %cst_29 : f32 to vector<2x32xf32>
    %85 = arith.mulf %84, %83 : vector<2x32xf32>
    %cst_30 = arith.constant 5.000000e-01 : f32
    %86 = vector.broadcast %cst_30 : f32 to vector<2x32xf32>
    %87 = arith.addf %85, %86 : vector<2x32xf32>
    %88 = vector.extract_strided_slice %77 {offsets = [0, 64], sizes = [2, 32], strides = [1, 1]} : vector<2x128xf32> to vector<2x32xf32>
    %89 = vector.extract_strided_slice %77 {offsets = [0, 96], sizes = [2, 32], strides = [1, 1]} : vector<2x128xf32> to vector<2x32xf32>
    %cst_31 = arith.constant 5.000000e-01 : f32
    %90 = vector.broadcast %cst_31 : f32 to vector<2x32xf32>
    %91 = arith.mulf %90, %89 : vector<2x32xf32>
    %cst_32 = arith.constant 5.000000e-01 : f32
    %92 = vector.broadcast %cst_32 : f32 to vector<2x32xf32>
    %93 = arith.addf %91, %92 : vector<2x32xf32>
    %94 = arith.mulf %87, %66 : vector<2x32xf32>
    %95 = arith.mulf %82, %88 : vector<2x32xf32>
    %96 = arith.addf %94, %95 : vector<2x32xf32>
    %97 = math.tanh %96 : vector<2x32xf32>
    %98 = arith.mulf %93, %97 : vector<2x32xf32>
    %99 = vector.extract_strided_slice %6 {offsets = [0, 3], sizes = [2, 1], strides = [1, 1]} : vector<2x8xi32> to vector<2x1xi32>
    %100 = vector.broadcast %99 : vector<2x1xi32> to vector<2x32xi32>
    %101 = arith.cmpi eq, %5, %100 : vector<2x32xi32>
    %102 = arith.extui %101 : vector<2x32xi1> to vector<2x32xi32>
    %103 = arith.sitofp %102 : vector<2x32xi32> to vector<2x32xf32>
    %cst_33 = arith.constant dense<0.000000e+00> : vector<2x128xf32>
    %104 = tpu.matmul %103, %0, %cst_33 {dimension_numbers = #tpu.dot_dimension_numbers<[1], [0], [0], [1], [0, 0, 1, 1], [], []>} : vector<2x32xf32>, vector<32x128xf32>, vector<2x128xf32> -> vector<2x128xf32>
    %cst_34 = arith.constant dense<0.000000e+00> : vector<2x128xf32>
    %105 = tpu.matmul %98, %1, %cst_34 {dimension_numbers = #tpu.dot_dimension_numbers<[1], [0], [0], [1], [0, 0, 1, 1], [], []>} : vector<2x32xf32>, vector<32x128xf32>, vector<2x128xf32> -> vector<2x128xf32>
    %106 = arith.addf %104, %105 : vector<2x128xf32>
    %107 = math.tanh %106 : vector<2x128xf32>
    %108 = vector.extract_strided_slice %107 {offsets = [0, 0], sizes = [2, 32], strides = [1, 1]} : vector<2x128xf32> to vector<2x32xf32>
    %cst_35 = arith.constant 5.000000e-01 : f32
    %109 = vector.broadcast %cst_35 : f32 to vector<2x32xf32>
    %110 = arith.mulf %109, %108 : vector<2x32xf32>
    %cst_36 = arith.constant 5.000000e-01 : f32
    %111 = vector.broadcast %cst_36 : f32 to vector<2x32xf32>
    %112 = arith.addf %110, %111 : vector<2x32xf32>
    %113 = vector.extract_strided_slice %107 {offsets = [0, 32], sizes = [2, 32], strides = [1, 1]} : vector<2x128xf32> to vector<2x32xf32>
    %cst_37 = arith.constant 5.000000e-01 : f32
    %114 = vector.broadcast %cst_37 : f32 to vector<2x32xf32>
    %115 = arith.mulf %114, %113 : vector<2x32xf32>
    %cst_38 = arith.constant 5.000000e-01 : f32
    %116 = vector.broadcast %cst_38 : f32 to vector<2x32xf32>
    %117 = arith.addf %115, %116 : vector<2x32xf32>
    %118 = vector.extract_strided_slice %107 {offsets = [0, 64], sizes = [2, 32], strides = [1, 1]} : vector<2x128xf32> to vector<2x32xf32>
    %119 = vector.extract_strided_slice %107 {offsets = [0, 96], sizes = [2, 32], strides = [1, 1]} : vector<2x128xf32> to vector<2x32xf32>
    %cst_39 = arith.constant 5.000000e-01 : f32
    %120 = vector.broadcast %cst_39 : f32 to vector<2x32xf32>
    %121 = arith.mulf %120, %119 : vector<2x32xf32>
    %cst_40 = arith.constant 5.000000e-01 : f32
    %122 = vector.broadcast %cst_40 : f32 to vector<2x32xf32>
    %123 = arith.addf %121, %122 : vector<2x32xf32>
    %124 = arith.mulf %117, %96 : vector<2x32xf32>
    %125 = arith.mulf %112, %118 : vector<2x32xf32>
    %126 = arith.addf %124, %125 : vector<2x32xf32>
    %127 = math.tanh %126 : vector<2x32xf32>
    %128 = arith.mulf %123, %127 : vector<2x32xf32>
    %129 = vector.extract_strided_slice %6 {offsets = [0, 4], sizes = [2, 1], strides = [1, 1]} : vector<2x8xi32> to vector<2x1xi32>
    %130 = vector.broadcast %129 : vector<2x1xi32> to vector<2x32xi32>
    %131 = arith.cmpi eq, %5, %130 : vector<2x32xi32>
    %132 = arith.extui %131 : vector<2x32xi1> to vector<2x32xi32>
    %133 = arith.sitofp %132 : vector<2x32xi32> to vector<2x32xf32>
    %cst_41 = arith.constant dense<0.000000e+00> : vector<2x128xf32>
    %134 = tpu.matmul %133, %0, %cst_41 {dimension_numbers = #tpu.dot_dimension_numbers<[1], [0], [0], [1], [0, 0, 1, 1], [], []>} : vector<2x32xf32>, vector<32x128xf32>, vector<2x128xf32> -> vector<2x128xf32>
    %cst_42 = arith.constant dense<0.000000e+00> : vector<2x128xf32>
    %135 = tpu.matmul %128, %1, %cst_42 {dimension_numbers = #tpu.dot_dimension_numbers<[1], [0], [0], [1], [0, 0, 1, 1], [], []>} : vector<2x32xf32>, vector<32x128xf32>, vector<2x128xf32> -> vector<2x128xf32>
    %136 = arith.addf %134, %135 : vector<2x128xf32>
    %137 = math.tanh %136 : vector<2x128xf32>
    %138 = vector.extract_strided_slice %137 {offsets = [0, 0], sizes = [2, 32], strides = [1, 1]} : vector<2x128xf32> to vector<2x32xf32>
    %cst_43 = arith.constant 5.000000e-01 : f32
    %139 = vector.broadcast %cst_43 : f32 to vector<2x32xf32>
    %140 = arith.mulf %139, %138 : vector<2x32xf32>
    %cst_44 = arith.constant 5.000000e-01 : f32
    %141 = vector.broadcast %cst_44 : f32 to vector<2x32xf32>
    %142 = arith.addf %140, %141 : vector<2x32xf32>
    %143 = vector.extract_strided_slice %137 {offsets = [0, 32], sizes = [2, 32], strides = [1, 1]} : vector<2x128xf32> to vector<2x32xf32>
    %cst_45 = arith.constant 5.000000e-01 : f32
    %144 = vector.broadcast %cst_45 : f32 to vector<2x32xf32>
    %145 = arith.mulf %144, %143 : vector<2x32xf32>
    %cst_46 = arith.constant 5.000000e-01 : f32
    %146 = vector.broadcast %cst_46 : f32 to vector<2x32xf32>
    %147 = arith.addf %145, %146 : vector<2x32xf32>
    %148 = vector.extract_strided_slice %137 {offsets = [0, 64], sizes = [2, 32], strides = [1, 1]} : vector<2x128xf32> to vector<2x32xf32>
    %149 = vector.extract_strided_slice %137 {offsets = [0, 96], sizes = [2, 32], strides = [1, 1]} : vector<2x128xf32> to vector<2x32xf32>
    %cst_47 = arith.constant 5.000000e-01 : f32
    %150 = vector.broadcast %cst_47 : f32 to vector<2x32xf32>
    %151 = arith.mulf %150, %149 : vector<2x32xf32>
    %cst_48 = arith.constant 5.000000e-01 : f32
    %152 = vector.broadcast %cst_48 : f32 to vector<2x32xf32>
    %153 = arith.addf %151, %152 : vector<2x32xf32>
    %154 = arith.mulf %147, %126 : vector<2x32xf32>
    %155 = arith.mulf %142, %148 : vector<2x32xf32>
    %156 = arith.addf %154, %155 : vector<2x32xf32>
    %157 = math.tanh %156 : vector<2x32xf32>
    %158 = arith.mulf %153, %157 : vector<2x32xf32>
    %159 = vector.extract_strided_slice %6 {offsets = [0, 5], sizes = [2, 1], strides = [1, 1]} : vector<2x8xi32> to vector<2x1xi32>
    %160 = vector.broadcast %159 : vector<2x1xi32> to vector<2x32xi32>
    %161 = arith.cmpi eq, %5, %160 : vector<2x32xi32>
    %162 = arith.extui %161 : vector<2x32xi1> to vector<2x32xi32>
    %163 = arith.sitofp %162 : vector<2x32xi32> to vector<2x32xf32>
    %cst_49 = arith.constant dense<0.000000e+00> : vector<2x128xf32>
    %164 = tpu.matmul %163, %0, %cst_49 {dimension_numbers = #tpu.dot_dimension_numbers<[1], [0], [0], [1], [0, 0, 1, 1], [], []>} : vector<2x32xf32>, vector<32x128xf32>, vector<2x128xf32> -> vector<2x128xf32>
    %cst_50 = arith.constant dense<0.000000e+00> : vector<2x128xf32>
    %165 = tpu.matmul %158, %1, %cst_50 {dimension_numbers = #tpu.dot_dimension_numbers<[1], [0], [0], [1], [0, 0, 1, 1], [], []>} : vector<2x32xf32>, vector<32x128xf32>, vector<2x128xf32> -> vector<2x128xf32>
    %166 = arith.addf %164, %165 : vector<2x128xf32>
    %167 = math.tanh %166 : vector<2x128xf32>
    %168 = vector.extract_strided_slice %167 {offsets = [0, 0], sizes = [2, 32], strides = [1, 1]} : vector<2x128xf32> to vector<2x32xf32>
    %cst_51 = arith.constant 5.000000e-01 : f32
    %169 = vector.broadcast %cst_51 : f32 to vector<2x32xf32>
    %170 = arith.mulf %169, %168 : vector<2x32xf32>
    %cst_52 = arith.constant 5.000000e-01 : f32
    %171 = vector.broadcast %cst_52 : f32 to vector<2x32xf32>
    %172 = arith.addf %170, %171 : vector<2x32xf32>
    %173 = vector.extract_strided_slice %167 {offsets = [0, 32], sizes = [2, 32], strides = [1, 1]} : vector<2x128xf32> to vector<2x32xf32>
    %cst_53 = arith.constant 5.000000e-01 : f32
    %174 = vector.broadcast %cst_53 : f32 to vector<2x32xf32>
    %175 = arith.mulf %174, %173 : vector<2x32xf32>
    %cst_54 = arith.constant 5.000000e-01 : f32
    %176 = vector.broadcast %cst_54 : f32 to vector<2x32xf32>
    %177 = arith.addf %175, %176 : vector<2x32xf32>
    %178 = vector.extract_strided_slice %167 {offsets = [0, 64], sizes = [2, 32], strides = [1, 1]} : vector<2x128xf32> to vector<2x32xf32>
    %179 = vector.extract_strided_slice %167 {offsets = [0, 96], sizes = [2, 32], strides = [1, 1]} : vector<2x128xf32> to vector<2x32xf32>
    %cst_55 = arith.constant 5.000000e-01 : f32
    %180 = vector.broadcast %cst_55 : f32 to vector<2x32xf32>
    %181 = arith.mulf %180, %179 : vector<2x32xf32>
    %cst_56 = arith.constant 5.000000e-01 : f32
    %182 = vector.broadcast %cst_56 : f32 to vector<2x32xf32>
    %183 = arith.addf %181, %182 : vector<2x32xf32>
    %184 = arith.mulf %177, %156 : vector<2x32xf32>
    %185 = arith.mulf %172, %178 : vector<2x32xf32>
    %186 = arith.addf %184, %185 : vector<2x32xf32>
    %187 = math.tanh %186 : vector<2x32xf32>
    %188 = arith.mulf %183, %187 : vector<2x32xf32>
    %189 = vector.extract_strided_slice %6 {offsets = [0, 6], sizes = [2, 1], strides = [1, 1]} : vector<2x8xi32> to vector<2x1xi32>
    %190 = vector.broadcast %189 : vector<2x1xi32> to vector<2x32xi32>
    %191 = arith.cmpi eq, %5, %190 : vector<2x32xi32>
    %192 = arith.extui %191 : vector<2x32xi1> to vector<2x32xi32>
    %193 = arith.sitofp %192 : vector<2x32xi32> to vector<2x32xf32>
    %cst_57 = arith.constant dense<0.000000e+00> : vector<2x128xf32>
    %194 = tpu.matmul %193, %0, %cst_57 {dimension_numbers = #tpu.dot_dimension_numbers<[1], [0], [0], [1], [0, 0, 1, 1], [], []>} : vector<2x32xf32>, vector<32x128xf32>, vector<2x128xf32> -> vector<2x128xf32>
    %cst_58 = arith.constant dense<0.000000e+00> : vector<2x128xf32>
    %195 = tpu.matmul %188, %1, %cst_58 {dimension_numbers = #tpu.dot_dimension_numbers<[1], [0], [0], [1], [0, 0, 1, 1], [], []>} : vector<2x32xf32>, vector<32x128xf32>, vector<2x128xf32> -> vector<2x128xf32>
    %196 = arith.addf %194, %195 : vector<2x128xf32>
    %197 = math.tanh %196 : vector<2x128xf32>
    %198 = vector.extract_strided_slice %197 {offsets = [0, 0], sizes = [2, 32], strides = [1, 1]} : vector<2x128xf32> to vector<2x32xf32>
    %cst_59 = arith.constant 5.000000e-01 : f32
    %199 = vector.broadcast %cst_59 : f32 to vector<2x32xf32>
    %200 = arith.mulf %199, %198 : vector<2x32xf32>
    %cst_60 = arith.constant 5.000000e-01 : f32
    %201 = vector.broadcast %cst_60 : f32 to vector<2x32xf32>
    %202 = arith.addf %200, %201 : vector<2x32xf32>
    %203 = vector.extract_strided_slice %197 {offsets = [0, 32], sizes = [2, 32], strides = [1, 1]} : vector<2x128xf32> to vector<2x32xf32>
    %cst_61 = arith.constant 5.000000e-01 : f32
    %204 = vector.broadcast %cst_61 : f32 to vector<2x32xf32>
    %205 = arith.mulf %204, %203 : vector<2x32xf32>
    %cst_62 = arith.constant 5.000000e-01 : f32
    %206 = vector.broadcast %cst_62 : f32 to vector<2x32xf32>
    %207 = arith.addf %205, %206 : vector<2x32xf32>
    %208 = vector.extract_strided_slice %197 {offsets = [0, 64], sizes = [2, 32], strides = [1, 1]} : vector<2x128xf32> to vector<2x32xf32>
    %209 = vector.extract_strided_slice %197 {offsets = [0, 96], sizes = [2, 32], strides = [1, 1]} : vector<2x128xf32> to vector<2x32xf32>
    %cst_63 = arith.constant 5.000000e-01 : f32
    %210 = vector.broadcast %cst_63 : f32 to vector<2x32xf32>
    %211 = arith.mulf %210, %209 : vector<2x32xf32>
    %cst_64 = arith.constant 5.000000e-01 : f32
    %212 = vector.broadcast %cst_64 : f32 to vector<2x32xf32>
    %213 = arith.addf %211, %212 : vector<2x32xf32>
    %214 = arith.mulf %207, %186 : vector<2x32xf32>
    %215 = arith.mulf %202, %208 : vector<2x32xf32>
    %216 = arith.addf %214, %215 : vector<2x32xf32>
    %217 = math.tanh %216 : vector<2x32xf32>
    %218 = arith.mulf %213, %217 : vector<2x32xf32>
    %219 = vector.extract_strided_slice %6 {offsets = [0, 7], sizes = [2, 1], strides = [1, 1]} : vector<2x8xi32> to vector<2x1xi32>
    %220 = vector.broadcast %219 : vector<2x1xi32> to vector<2x32xi32>
    %221 = arith.cmpi eq, %5, %220 : vector<2x32xi32>
    %222 = arith.extui %221 : vector<2x32xi1> to vector<2x32xi32>
    %223 = arith.sitofp %222 : vector<2x32xi32> to vector<2x32xf32>
    %cst_65 = arith.constant dense<0.000000e+00> : vector<2x128xf32>
    %224 = tpu.matmul %223, %0, %cst_65 {dimension_numbers = #tpu.dot_dimension_numbers<[1], [0], [0], [1], [0, 0, 1, 1], [], []>} : vector<2x32xf32>, vector<32x128xf32>, vector<2x128xf32> -> vector<2x128xf32>
    %cst_66 = arith.constant dense<0.000000e+00> : vector<2x128xf32>
    %225 = tpu.matmul %218, %1, %cst_66 {dimension_numbers = #tpu.dot_dimension_numbers<[1], [0], [0], [1], [0, 0, 1, 1], [], []>} : vector<2x32xf32>, vector<32x128xf32>, vector<2x128xf32> -> vector<2x128xf32>
    %226 = arith.addf %224, %225 : vector<2x128xf32>
    %227 = math.tanh %226 : vector<2x128xf32>
    %228 = vector.extract_strided_slice %227 {offsets = [0, 0], sizes = [2, 32], strides = [1, 1]} : vector<2x128xf32> to vector<2x32xf32>
    %cst_67 = arith.constant 5.000000e-01 : f32
    %229 = vector.broadcast %cst_67 : f32 to vector<2x32xf32>
    %230 = arith.mulf %229, %228 : vector<2x32xf32>
    %cst_68 = arith.constant 5.000000e-01 : f32
    %231 = vector.broadcast %cst_68 : f32 to vector<2x32xf32>
    %232 = arith.addf %230, %231 : vector<2x32xf32>
    %233 = vector.extract_strided_slice %227 {offsets = [0, 32], sizes = [2, 32], strides = [1, 1]} : vector<2x128xf32> to vector<2x32xf32>
    %cst_69 = arith.constant 5.000000e-01 : f32
    %234 = vector.broadcast %cst_69 : f32 to vector<2x32xf32>
    %235 = arith.mulf %234, %233 : vector<2x32xf32>
    %cst_70 = arith.constant 5.000000e-01 : f32
    %236 = vector.broadcast %cst_70 : f32 to vector<2x32xf32>
    %237 = arith.addf %235, %236 : vector<2x32xf32>
    %238 = vector.extract_strided_slice %227 {offsets = [0, 64], sizes = [2, 32], strides = [1, 1]} : vector<2x128xf32> to vector<2x32xf32>
    %239 = vector.extract_strided_slice %227 {offsets = [0, 96], sizes = [2, 32], strides = [1, 1]} : vector<2x128xf32> to vector<2x32xf32>
    %cst_71 = arith.constant 5.000000e-01 : f32
    %240 = vector.broadcast %cst_71 : f32 to vector<2x32xf32>
    %241 = arith.mulf %240, %239 : vector<2x32xf32>
    %cst_72 = arith.constant 5.000000e-01 : f32
    %242 = vector.broadcast %cst_72 : f32 to vector<2x32xf32>
    %243 = arith.addf %241, %242 : vector<2x32xf32>
    %244 = arith.mulf %237, %216 : vector<2x32xf32>
    %245 = arith.mulf %232, %238 : vector<2x32xf32>
    %246 = arith.addf %244, %245 : vector<2x32xf32>
    %247 = math.tanh %246 : vector<2x32xf32>
    %248 = arith.mulf %243, %247 : vector<2x32xf32>
    %cst_73 = arith.constant 0.000000e+00 : f32
    %249 = vector.broadcast %cst_73 : f32 to vector<2x32xf32>
    %c1_i32 = arith.constant 1 : i32
    %250 = vector.broadcast %c1_i32 : i32 to vector<2x32xi32>
    %251 = arith.cmpi eq, %5, %250 : vector<2x32xi32>
    %252 = arith.extui %251 : vector<2x32xi1> to vector<2x32xi32>
    %253 = arith.sitofp %252 : vector<2x32xi32> to vector<2x32xf32>
    %254 = vector.extract_strided_slice %4 {offsets = [0, 0], sizes = [32, 128], strides = [1, 1]} : vector<32x160xf32> to vector<32x128xf32>
    %cst_74 = arith.constant dense<0.000000e+00> : vector<2x128xf32>
    %255 = tpu.matmul %248, %254, %cst_74 {dimension_numbers = #tpu.dot_dimension_numbers<[1], [0], [0], [1], [0, 0, 1, 1], [], []>} : vector<2x32xf32>, vector<32x128xf32>, vector<2x128xf32> -> vector<2x128xf32>
    %cst_75 = arith.constant dense<0.000000e+00> : vector<2x128xf32>
    %256 = tpu.matmul %253, %2, %cst_75 {dimension_numbers = #tpu.dot_dimension_numbers<[1], [0], [0], [1], [0, 0, 1, 1], [], []>} : vector<2x32xf32>, vector<32x128xf32>, vector<2x128xf32> -> vector<2x128xf32>
    %257 = arith.addf %256, %255 : vector<2x128xf32>
    %258 = math.tanh %257 : vector<2x128xf32>
    %259 = vector.extract_strided_slice %258 {offsets = [0, 0], sizes = [2, 32], strides = [1, 1]} : vector<2x128xf32> to vector<2x32xf32>
    %cst_76 = arith.constant 5.000000e-01 : f32
    %260 = vector.broadcast %cst_76 : f32 to vector<2x32xf32>
    %261 = arith.mulf %260, %259 : vector<2x32xf32>
    %cst_77 = arith.constant 5.000000e-01 : f32
    %262 = vector.broadcast %cst_77 : f32 to vector<2x32xf32>
    %263 = arith.addf %261, %262 : vector<2x32xf32>
    %264 = vector.extract_strided_slice %258 {offsets = [0, 32], sizes = [2, 32], strides = [1, 1]} : vector<2x128xf32> to vector<2x32xf32>
    %cst_78 = arith.constant 5.000000e-01 : f32
    %265 = vector.broadcast %cst_78 : f32 to vector<2x32xf32>
    %266 = arith.mulf %265, %264 : vector<2x32xf32>
    %cst_79 = arith.constant 5.000000e-01 : f32
    %267 = vector.broadcast %cst_79 : f32 to vector<2x32xf32>
    %268 = arith.addf %266, %267 : vector<2x32xf32>
    %269 = vector.extract_strided_slice %258 {offsets = [0, 64], sizes = [2, 32], strides = [1, 1]} : vector<2x128xf32> to vector<2x32xf32>
    %270 = vector.extract_strided_slice %258 {offsets = [0, 96], sizes = [2, 32], strides = [1, 1]} : vector<2x128xf32> to vector<2x32xf32>
    %cst_80 = arith.constant 5.000000e-01 : f32
    %271 = vector.broadcast %cst_80 : f32 to vector<2x32xf32>
    %272 = arith.mulf %271, %270 : vector<2x32xf32>
    %cst_81 = arith.constant 5.000000e-01 : f32
    %273 = vector.broadcast %cst_81 : f32 to vector<2x32xf32>
    %274 = arith.addf %272, %273 : vector<2x32xf32>
    %275 = arith.mulf %268, %249 : vector<2x32xf32>
    %276 = arith.mulf %263, %269 : vector<2x32xf32>
    %277 = arith.addf %275, %276 : vector<2x32xf32>
    %278 = math.tanh %277 : vector<2x32xf32>
    %279 = arith.mulf %274, %278 : vector<2x32xf32>
    %cst_82 = arith.constant dense<0.000000e+00> : vector<2x160xf32>
    %280 = tpu.matmul %279, %4, %cst_82 {dimension_numbers = #tpu.dot_dimension_numbers<[1], [0], [0], [1], [0, 0, 1, 1], [], []>} : vector<2x32xf32>, vector<32x160xf32>, vector<2x160xf32> -> vector<2x160xf32>
    %281 = vector.extract_strided_slice %280 {offsets = [0, 0], sizes = [2, 128], strides = [1, 1]} : vector<2x160xf32> to vector<2x128xf32>
    %282 = vector.extract_strided_slice %280 {offsets = [0, 128], sizes = [2, 32], strides = [1, 1]} : vector<2x160xf32> to vector<2x32xf32>
    %283 = vector.broadcast %3 : vector<1x32xf32> to vector<2x32xf32>
    %284 = arith.addf %282, %283 : vector<2x32xf32>
    %285 = vector.shape_cast %284 : vector<2x32xf32> to vector<2x1x32xf32>
    %c0_83 = arith.constant 0 : index
    %c0_84 = arith.constant 0 : index
    %c0_85 = arith.constant 0 : index
    %286 = vector.load %arg3[%c0_83, %c0_84, %c0_85] : memref<2x8x32xf32, #tpu.memory_space<vmem>>, vector<2x1x32xf32>
    tpu.vector_store %arg3[%c0_83, %c0_84, %c0_85], %285 {strides = array<i32>} : memref<2x8x32xf32, #tpu.memory_space<vmem>>, vector<2x1x32xf32>,
    %cst_86 = arith.constant dense<0xFF800000> : vector<2xf32>
    %287 = vector.multi_reduction <maximumf>, %284, %cst_86 [1] : vector<2x32xf32> to vector<2xf32>
    %288 = vector.shape_cast %287 : vector<2xf32> to vector<2x1xf32>
    %289 = vector.broadcast %288 : vector<2x1xf32> to vector<2x32xf32>
    %290 = arith.cmpf oeq, %284, %289 : vector<2x32xf32>
    %291 = arith.extui %290 : vector<2x32xi1> to vector<2x32xi32>
    %292 = arith.sitofp %291 : vector<2x32xi32> to vector<2x32xf32>
    %cst_87 = arith.constant dense<0.000000e+00> : vector<2x128xf32>
    %293 = tpu.matmul %292, %2, %cst_87 {dimension_numbers = #tpu.dot_dimension_numbers<[1], [0], [0], [1], [0, 0, 1, 1], [], []>} : vector<2x32xf32>, vector<32x128xf32>, vector<2x128xf32> -> vector<2x128xf32>
    %294 = arith.addf %293, %281 : vector<2x128xf32>
    %295 = math.tanh %294 : vector<2x128xf32>
    %296 = vector.extract_strided_slice %295 {offsets = [0, 0], sizes = [2, 32], strides = [1, 1]} : vector<2x128xf32> to vector<2x32xf32>
    %cst_88 = arith.constant 5.000000e-01 : f32
    %297 = vector.broadcast %cst_88 : f32 to vector<2x32xf32>
    %298 = arith.mulf %297, %296 : vector<2x32xf32>
    %cst_89 = arith.constant 5.000000e-01 : f32
    %299 = vector.broadcast %cst_89 : f32 to vector<2x32xf32>
    %300 = arith.addf %298, %299 : vector<2x32xf32>
    %301 = vector.extract_strided_slice %295 {offsets = [0, 32], sizes = [2, 32], strides = [1, 1]} : vector<2x128xf32> to vector<2x32xf32>
    %cst_90 = arith.constant 5.000000e-01 : f32
    %302 = vector.broadcast %cst_90 : f32 to vector<2x32xf32>
    %303 = arith.mulf %302, %301 : vector<2x32xf32>
    %cst_91 = arith.constant 5.000000e-01 : f32
    %304 = vector.broadcast %cst_91 : f32 to vector<2x32xf32>
    %305 = arith.addf %303, %304 : vector<2x32xf32>
    %306 = vector.extract_strided_slice %295 {offsets = [0, 64], sizes = [2, 32], strides = [1, 1]} : vector<2x128xf32> to vector<2x32xf32>
    %307 = vector.extract_strided_slice %295 {offsets = [0, 96], sizes = [2, 32], strides = [1, 1]} : vector<2x128xf32> to vector<2x32xf32>
    %cst_92 = arith.constant 5.000000e-01 : f32
    %308 = vector.broadcast %cst_92 : f32 to vector<2x32xf32>
    %309 = arith.mulf %308, %307 : vector<2x32xf32>
    %cst_93 = arith.constant 5.000000e-01 : f32
    %310 = vector.broadcast %cst_93 : f32 to vector<2x32xf32>
    %311 = arith.addf %309, %310 : vector<2x32xf32>
    %312 = arith.mulf %305, %277 : vector<2x32xf32>
    %313 = arith.mulf %300, %306 : vector<2x32xf32>
    %314 = arith.addf %312, %313 : vector<2x32xf32>
    %315 = math.tanh %314 : vector<2x32xf32>
    %316 = arith.mulf %311, %315 : vector<2x32xf32>
    %cst_94 = arith.constant dense<0.000000e+00> : vector<2x160xf32>
    %317 = tpu.matmul %316, %4, %cst_94 {dimension_numbers = #tpu.dot_dimension_numbers<[1], [0], [0], [1], [0, 0, 1, 1], [], []>} : vector<2x32xf32>, vector<32x160xf32>, vector<2x160xf32> -> vector<2x160xf32>
    %318 = vector.extract_strided_slice %317 {offsets = [0, 0], sizes = [2, 128], strides = [1, 1]} : vector<2x160xf32> to vector<2x128xf32>
    %319 = vector.extract_strided_slice %317 {offsets = [0, 128], sizes = [2, 32], strides = [1, 1]} : vector<2x160xf32> to vector<2x32xf32>
    %320 = vector.broadcast %3 : vector<1x32xf32> to vector<2x32xf32>
    %321 = arith.addf %319, %320 : vector<2x32xf32>
    %322 = vector.shape_cast %321 : vector<2x32xf32> to vector<2x1x32xf32>
    %c0_95 = arith.constant 0 : index
    %c1 = arith.constant 1 : index
    %c0_96 = arith.constant 0 : index
    %323 = vector.load %arg3[%c0_95, %c1, %c0_96] : memref<2x8x32xf32, #tpu.memory_space<vmem>>, vector<2x1x32xf32>
    tpu.vector_store %arg3[%c0_95, %c1, %c0_96], %322 {strides = array<i32>} : memref<2x8x32xf32, #tpu.memory_space<vmem>>, vector<2x1x32xf32>,
    %cst_97 = arith.constant dense<0xFF800000> : vector<2xf32>
    %324 = vector.multi_reduction <maximumf>, %321, %cst_97 [1] : vector<2x32xf32> to vector<2xf32>
    %325 = vector.shape_cast %324 : vector<2xf32> to vector<2x1xf32>
    %326 = vector.broadcast %325 : vector<2x1xf32> to vector<2x32xf32>
    %327 = arith.cmpf oeq, %321, %326 : vector<2x32xf32>
    %328 = arith.extui %327 : vector<2x32xi1> to vector<2x32xi32>
    %329 = arith.sitofp %328 : vector<2x32xi32> to vector<2x32xf32>
    %cst_98 = arith.constant dense<0.000000e+00> : vector<2x128xf32>
    %330 = tpu.matmul %329, %2, %cst_98 {dimension_numbers = #tpu.dot_dimension_numbers<[1], [0], [0], [1], [0, 0, 1, 1], [], []>} : vector<2x32xf32>, vector<32x128xf32>, vector<2x128xf32> -> vector<2x128xf32>
    %331 = arith.addf %330, %318 : vector<2x128xf32>
    %332 = math.tanh %331 : vector<2x128xf32>
    %333 = vector.extract_strided_slice %332 {offsets = [0, 0], sizes = [2, 32], strides = [1, 1]} : vector<2x128xf32> to vector<2x32xf32>
    %cst_99 = arith.constant 5.000000e-01 : f32
    %334 = vector.broadcast %cst_99 : f32 to vector<2x32xf32>
    %335 = arith.mulf %334, %333 : vector<2x32xf32>
    %cst_100 = arith.constant 5.000000e-01 : f32
    %336 = vector.broadcast %cst_100 : f32 to vector<2x32xf32>
    %337 = arith.addf %335, %336 : vector<2x32xf32>
    %338 = vector.extract_strided_slice %332 {offsets = [0, 32], sizes = [2, 32], strides = [1, 1]} : vector<2x128xf32> to vector<2x32xf32>
    %cst_101 = arith.constant 5.000000e-01 : f32
    %339 = vector.broadcast %cst_101 : f32 to vector<2x32xf32>
    %340 = arith.mulf %339, %338 : vector<2x32xf32>
    %cst_102 = arith.constant 5.000000e-01 : f32
    %341 = vector.broadcast %cst_102 : f32 to vector<2x32xf32>
    %342 = arith.addf %340, %341 : vector<2x32xf32>
    %343 = vector.extract_strided_slice %332 {offsets = [0, 64], sizes = [2, 32], strides = [1, 1]} : vector<2x128xf32> to vector<2x32xf32>
    %344 = vector.extract_strided_slice %332 {offsets = [0, 96], sizes = [2, 32], strides = [1, 1]} : vector<2x128xf32> to vector<2x32xf32>
    %cst_103 = arith.constant 5.000000e-01 : f32
    %345 = vector.broadcast %cst_103 : f32 to vector<2x32xf32>
    %346 = arith.mulf %345, %344 : vector<2x32xf32>
    %cst_104 = arith.constant 5.000000e-01 : f32
    %347 = vector.broadcast %cst_104 : f32 to vector<2x32xf32>
    %348 = arith.addf %346, %347 : vector<2x32xf32>
    %349 = arith.mulf %342, %314 : vector<2x32xf32>
    %350 = arith.mulf %337, %343 : vector<2x32xf32>
    %351 = arith.addf %349, %350 : vector<2x32xf32>
    %352 = math.tanh %351 : vector<2x32xf32>
    %353 = arith.mulf %348, %352 : vector<2x32xf32>
    %cst_105 = arith.constant dense<0.000000e+00> : vector<2x160xf32>
    %354 = tpu.matmul %353, %4, %cst_105 {dimension_numbers = #tpu.dot_dimension_numbers<[1], [0], [0], [1], [0, 0, 1, 1], [], []>} : vector<2x32xf32>, vector<32x160xf32>, vector<2x160xf32> -> vector<2x160xf32>
    %355 = vector.extract_strided_slice %354 {offsets = [0, 0], sizes = [2, 128], strides = [1, 1]} : vector<2x160xf32> to vector<2x128xf32>
    %356 = vector.extract_strided_slice %354 {offsets = [0, 128], sizes = [2, 32], strides = [1, 1]} : vector<2x160xf32> to vector<2x32xf32>
    %357 = vector.broadcast %3 : vector<1x32xf32> to vector<2x32xf32>
    %358 = arith.addf %356, %357 : vector<2x32xf32>
    %359 = vector.shape_cast %358 : vector<2x32xf32> to vector<2x1x32xf32>
    %c0_106 = arith.constant 0 : index
    %c2 = arith.constant 2 : index
    %c0_107 = arith.constant 0 : index
    %360 = vector.load %arg3[%c0_106, %c2, %c0_107] : memref<2x8x32xf32, #tpu.memory_space<vmem>>, vector<2x1x32xf32>
    tpu.vector_store %arg3[%c0_106, %c2, %c0_107], %359 {strides = array<i32>} : memref<2x8x32xf32, #tpu.memory_space<vmem>>, vector<2x1x32xf32>,
    %cst_108 = arith.constant dense<0xFF800000> : vector<2xf32>
    %361 = vector.multi_reduction <maximumf>, %358, %cst_108 [1] : vector<2x32xf32> to vector<2xf32>
    %362 = vector.shape_cast %361 : vector<2xf32> to vector<2x1xf32>
    %363 = vector.broadcast %362 : vector<2x1xf32> to vector<2x32xf32>
    %364 = arith.cmpf oeq, %358, %363 : vector<2x32xf32>
    %365 = arith.extui %364 : vector<2x32xi1> to vector<2x32xi32>
    %366 = arith.sitofp %365 : vector<2x32xi32> to vector<2x32xf32>
    %cst_109 = arith.constant dense<0.000000e+00> : vector<2x128xf32>
    %367 = tpu.matmul %366, %2, %cst_109 {dimension_numbers = #tpu.dot_dimension_numbers<[1], [0], [0], [1], [0, 0, 1, 1], [], []>} : vector<2x32xf32>, vector<32x128xf32>, vector<2x128xf32> -> vector<2x128xf32>
    %368 = arith.addf %367, %355 : vector<2x128xf32>
    %369 = math.tanh %368 : vector<2x128xf32>
    %370 = vector.extract_strided_slice %369 {offsets = [0, 0], sizes = [2, 32], strides = [1, 1]} : vector<2x128xf32> to vector<2x32xf32>
    %cst_110 = arith.constant 5.000000e-01 : f32
    %371 = vector.broadcast %cst_110 : f32 to vector<2x32xf32>
    %372 = arith.mulf %371, %370 : vector<2x32xf32>
    %cst_111 = arith.constant 5.000000e-01 : f32
    %373 = vector.broadcast %cst_111 : f32 to vector<2x32xf32>
    %374 = arith.addf %372, %373 : vector<2x32xf32>
    %375 = vector.extract_strided_slice %369 {offsets = [0, 32], sizes = [2, 32], strides = [1, 1]} : vector<2x128xf32> to vector<2x32xf32>
    %cst_112 = arith.constant 5.000000e-01 : f32
    %376 = vector.broadcast %cst_112 : f32 to vector<2x32xf32>
    %377 = arith.mulf %376, %375 : vector<2x32xf32>
    %cst_113 = arith.constant 5.000000e-01 : f32
    %378 = vector.broadcast %cst_113 : f32 to vector<2x32xf32>
    %379 = arith.addf %377, %378 : vector<2x32xf32>
    %380 = vector.extract_strided_slice %369 {offsets = [0, 64], sizes = [2, 32], strides = [1, 1]} : vector<2x128xf32> to vector<2x32xf32>
    %381 = vector.extract_strided_slice %369 {offsets = [0, 96], sizes = [2, 32], strides = [1, 1]} : vector<2x128xf32> to vector<2x32xf32>
    %cst_114 = arith.constant 5.000000e-01 : f32
    %382 = vector.broadcast %cst_114 : f32 to vector<2x32xf32>
    %383 = arith.mulf %382, %381 : vector<2x32xf32>
    %cst_115 = arith.constant 5.000000e-01 : f32
    %384 = vector.broadcast %cst_115 : f32 to vector<2x32xf32>
    %385 = arith.addf %383, %384 : vector<2x32xf32>
    %386 = arith.mulf %379, %351 : vector<2x32xf32>
    %387 = arith.mulf %374, %380 : vector<2x32xf32>
    %388 = arith.addf %386, %387 : vector<2x32xf32>
    %389 = math.tanh %388 : vector<2x32xf32>
    %390 = arith.mulf %385, %389 : vector<2x32xf32>
    %cst_116 = arith.constant dense<0.000000e+00> : vector<2x160xf32>
    %391 = tpu.matmul %390, %4, %cst_116 {dimension_numbers = #tpu.dot_dimension_numbers<[1], [0], [0], [1], [0, 0, 1, 1], [], []>} : vector<2x32xf32>, vector<32x160xf32>, vector<2x160xf32> -> vector<2x160xf32>
    %392 = vector.extract_strided_slice %391 {offsets = [0, 0], sizes = [2, 128], strides = [1, 1]} : vector<2x160xf32> to vector<2x128xf32>
    %393 = vector.extract_strided_slice %391 {offsets = [0, 128], sizes = [2, 32], strides = [1, 1]} : vector<2x160xf32> to vector<2x32xf32>
    %394 = vector.broadcast %3 : vector<1x32xf32> to vector<2x32xf32>
    %395 = arith.addf %393, %394 : vector<2x32xf32>
    %396 = vector.shape_cast %395 : vector<2x32xf32> to vector<2x1x32xf32>
    %c0_117 = arith.constant 0 : index
    %c3 = arith.constant 3 : index
    %c0_118 = arith.constant 0 : index
    %397 = vector.load %arg3[%c0_117, %c3, %c0_118] : memref<2x8x32xf32, #tpu.memory_space<vmem>>, vector<2x1x32xf32>
    tpu.vector_store %arg3[%c0_117, %c3, %c0_118], %396 {strides = array<i32>} : memref<2x8x32xf32, #tpu.memory_space<vmem>>, vector<2x1x32xf32>,
    %cst_119 = arith.constant dense<0xFF800000> : vector<2xf32>
    %398 = vector.multi_reduction <maximumf>, %395, %cst_119 [1] : vector<2x32xf32> to vector<2xf32>
    %399 = vector.shape_cast %398 : vector<2xf32> to vector<2x1xf32>
    %400 = vector.broadcast %399 : vector<2x1xf32> to vector<2x32xf32>
    %401 = arith.cmpf oeq, %395, %400 : vector<2x32xf32>
    %402 = arith.extui %401 : vector<2x32xi1> to vector<2x32xi32>
    %403 = arith.sitofp %402 : vector<2x32xi32> to vector<2x32xf32>
    %cst_120 = arith.constant dense<0.000000e+00> : vector<2x128xf32>
    %404 = tpu.matmul %403, %2, %cst_120 {dimension_numbers = #tpu.dot_dimension_numbers<[1], [0], [0], [1], [0, 0, 1, 1], [], []>} : vector<2x32xf32>, vector<32x128xf32>, vector<2x128xf32> -> vector<2x128xf32>
    %405 = arith.addf %404, %392 : vector<2x128xf32>
    %406 = math.tanh %405 : vector<2x128xf32>
    %407 = vector.extract_strided_slice %406 {offsets = [0, 0], sizes = [2, 32], strides = [1, 1]} : vector<2x128xf32> to vector<2x32xf32>
    %cst_121 = arith.constant 5.000000e-01 : f32
    %408 = vector.broadcast %cst_121 : f32 to vector<2x32xf32>
    %409 = arith.mulf %408, %407 : vector<2x32xf32>
    %cst_122 = arith.constant 5.000000e-01 : f32
    %410 = vector.broadcast %cst_122 : f32 to vector<2x32xf32>
    %411 = arith.addf %409, %410 : vector<2x32xf32>
    %412 = vector.extract_strided_slice %406 {offsets = [0, 32], sizes = [2, 32], strides = [1, 1]} : vector<2x128xf32> to vector<2x32xf32>
    %cst_123 = arith.constant 5.000000e-01 : f32
    %413 = vector.broadcast %cst_123 : f32 to vector<2x32xf32>
    %414 = arith.mulf %413, %412 : vector<2x32xf32>
    %cst_124 = arith.constant 5.000000e-01 : f32
    %415 = vector.broadcast %cst_124 : f32 to vector<2x32xf32>
    %416 = arith.addf %414, %415 : vector<2x32xf32>
    %417 = vector.extract_strided_slice %406 {offsets = [0, 64], sizes = [2, 32], strides = [1, 1]} : vector<2x128xf32> to vector<2x32xf32>
    %418 = vector.extract_strided_slice %406 {offsets = [0, 96], sizes = [2, 32], strides = [1, 1]} : vector<2x128xf32> to vector<2x32xf32>
    %cst_125 = arith.constant 5.000000e-01 : f32
    %419 = vector.broadcast %cst_125 : f32 to vector<2x32xf32>
    %420 = arith.mulf %419, %418 : vector<2x32xf32>
    %cst_126 = arith.constant 5.000000e-01 : f32
    %421 = vector.broadcast %cst_126 : f32 to vector<2x32xf32>
    %422 = arith.addf %420, %421 : vector<2x32xf32>
    %423 = arith.mulf %416, %388 : vector<2x32xf32>
    %424 = arith.mulf %411, %417 : vector<2x32xf32>
    %425 = arith.addf %423, %424 : vector<2x32xf32>
    %426 = math.tanh %425 : vector<2x32xf32>
    %427 = arith.mulf %422, %426 : vector<2x32xf32>
    %cst_127 = arith.constant dense<0.000000e+00> : vector<2x160xf32>
    %428 = tpu.matmul %427, %4, %cst_127 {dimension_numbers = #tpu.dot_dimension_numbers<[1], [0], [0], [1], [0, 0, 1, 1], [], []>} : vector<2x32xf32>, vector<32x160xf32>, vector<2x160xf32> -> vector<2x160xf32>
    %429 = vector.extract_strided_slice %428 {offsets = [0, 0], sizes = [2, 128], strides = [1, 1]} : vector<2x160xf32> to vector<2x128xf32>
    %430 = vector.extract_strided_slice %428 {offsets = [0, 128], sizes = [2, 32], strides = [1, 1]} : vector<2x160xf32> to vector<2x32xf32>
    %431 = vector.broadcast %3 : vector<1x32xf32> to vector<2x32xf32>
    %432 = arith.addf %430, %431 : vector<2x32xf32>
    %433 = vector.shape_cast %432 : vector<2x32xf32> to vector<2x1x32xf32>
    %c0_128 = arith.constant 0 : index
    %c4 = arith.constant 4 : index
    %c0_129 = arith.constant 0 : index
    %434 = vector.load %arg3[%c0_128, %c4, %c0_129] : memref<2x8x32xf32, #tpu.memory_space<vmem>>, vector<2x1x32xf32>
    tpu.vector_store %arg3[%c0_128, %c4, %c0_129], %433 {strides = array<i32>} : memref<2x8x32xf32, #tpu.memory_space<vmem>>, vector<2x1x32xf32>,
    %cst_130 = arith.constant dense<0xFF800000> : vector<2xf32>
    %435 = vector.multi_reduction <maximumf>, %432, %cst_130 [1] : vector<2x32xf32> to vector<2xf32>
    %436 = vector.shape_cast %435 : vector<2xf32> to vector<2x1xf32>
    %437 = vector.broadcast %436 : vector<2x1xf32> to vector<2x32xf32>
    %438 = arith.cmpf oeq, %432, %437 : vector<2x32xf32>
    %439 = arith.extui %438 : vector<2x32xi1> to vector<2x32xi32>
    %440 = arith.sitofp %439 : vector<2x32xi32> to vector<2x32xf32>
    %cst_131 = arith.constant dense<0.000000e+00> : vector<2x128xf32>
    %441 = tpu.matmul %440, %2, %cst_131 {dimension_numbers = #tpu.dot_dimension_numbers<[1], [0], [0], [1], [0, 0, 1, 1], [], []>} : vector<2x32xf32>, vector<32x128xf32>, vector<2x128xf32> -> vector<2x128xf32>
    %442 = arith.addf %441, %429 : vector<2x128xf32>
    %443 = math.tanh %442 : vector<2x128xf32>
    %444 = vector.extract_strided_slice %443 {offsets = [0, 0], sizes = [2, 32], strides = [1, 1]} : vector<2x128xf32> to vector<2x32xf32>
    %cst_132 = arith.constant 5.000000e-01 : f32
    %445 = vector.broadcast %cst_132 : f32 to vector<2x32xf32>
    %446 = arith.mulf %445, %444 : vector<2x32xf32>
    %cst_133 = arith.constant 5.000000e-01 : f32
    %447 = vector.broadcast %cst_133 : f32 to vector<2x32xf32>
    %448 = arith.addf %446, %447 : vector<2x32xf32>
    %449 = vector.extract_strided_slice %443 {offsets = [0, 32], sizes = [2, 32], strides = [1, 1]} : vector<2x128xf32> to vector<2x32xf32>
    %cst_134 = arith.constant 5.000000e-01 : f32
    %450 = vector.broadcast %cst_134 : f32 to vector<2x32xf32>
    %451 = arith.mulf %450, %449 : vector<2x32xf32>
    %cst_135 = arith.constant 5.000000e-01 : f32
    %452 = vector.broadcast %cst_135 : f32 to vector<2x32xf32>
    %453 = arith.addf %451, %452 : vector<2x32xf32>
    %454 = vector.extract_strided_slice %443 {offsets = [0, 64], sizes = [2, 32], strides = [1, 1]} : vector<2x128xf32> to vector<2x32xf32>
    %455 = vector.extract_strided_slice %443 {offsets = [0, 96], sizes = [2, 32], strides = [1, 1]} : vector<2x128xf32> to vector<2x32xf32>
    %cst_136 = arith.constant 5.000000e-01 : f32
    %456 = vector.broadcast %cst_136 : f32 to vector<2x32xf32>
    %457 = arith.mulf %456, %455 : vector<2x32xf32>
    %cst_137 = arith.constant 5.000000e-01 : f32
    %458 = vector.broadcast %cst_137 : f32 to vector<2x32xf32>
    %459 = arith.addf %457, %458 : vector<2x32xf32>
    %460 = arith.mulf %453, %425 : vector<2x32xf32>
    %461 = arith.mulf %448, %454 : vector<2x32xf32>
    %462 = arith.addf %460, %461 : vector<2x32xf32>
    %463 = math.tanh %462 : vector<2x32xf32>
    %464 = arith.mulf %459, %463 : vector<2x32xf32>
    %cst_138 = arith.constant dense<0.000000e+00> : vector<2x160xf32>
    %465 = tpu.matmul %464, %4, %cst_138 {dimension_numbers = #tpu.dot_dimension_numbers<[1], [0], [0], [1], [0, 0, 1, 1], [], []>} : vector<2x32xf32>, vector<32x160xf32>, vector<2x160xf32> -> vector<2x160xf32>
    %466 = vector.extract_strided_slice %465 {offsets = [0, 0], sizes = [2, 128], strides = [1, 1]} : vector<2x160xf32> to vector<2x128xf32>
    %467 = vector.extract_strided_slice %465 {offsets = [0, 128], sizes = [2, 32], strides = [1, 1]} : vector<2x160xf32> to vector<2x32xf32>
    %468 = vector.broadcast %3 : vector<1x32xf32> to vector<2x32xf32>
    %469 = arith.addf %467, %468 : vector<2x32xf32>
    %470 = vector.shape_cast %469 : vector<2x32xf32> to vector<2x1x32xf32>
    %c0_139 = arith.constant 0 : index
    %c5 = arith.constant 5 : index
    %c0_140 = arith.constant 0 : index
    %471 = vector.load %arg3[%c0_139, %c5, %c0_140] : memref<2x8x32xf32, #tpu.memory_space<vmem>>, vector<2x1x32xf32>
    tpu.vector_store %arg3[%c0_139, %c5, %c0_140], %470 {strides = array<i32>} : memref<2x8x32xf32, #tpu.memory_space<vmem>>, vector<2x1x32xf32>,
    %cst_141 = arith.constant dense<0xFF800000> : vector<2xf32>
    %472 = vector.multi_reduction <maximumf>, %469, %cst_141 [1] : vector<2x32xf32> to vector<2xf32>
    %473 = vector.shape_cast %472 : vector<2xf32> to vector<2x1xf32>
    %474 = vector.broadcast %473 : vector<2x1xf32> to vector<2x32xf32>
    %475 = arith.cmpf oeq, %469, %474 : vector<2x32xf32>
    %476 = arith.extui %475 : vector<2x32xi1> to vector<2x32xi32>
    %477 = arith.sitofp %476 : vector<2x32xi32> to vector<2x32xf32>
    %cst_142 = arith.constant dense<0.000000e+00> : vector<2x128xf32>
    %478 = tpu.matmul %477, %2, %cst_142 {dimension_numbers = #tpu.dot_dimension_numbers<[1], [0], [0], [1], [0, 0, 1, 1], [], []>} : vector<2x32xf32>, vector<32x128xf32>, vector<2x128xf32> -> vector<2x128xf32>
    %479 = arith.addf %478, %466 : vector<2x128xf32>
    %480 = math.tanh %479 : vector<2x128xf32>
    %481 = vector.extract_strided_slice %480 {offsets = [0, 0], sizes = [2, 32], strides = [1, 1]} : vector<2x128xf32> to vector<2x32xf32>
    %cst_143 = arith.constant 5.000000e-01 : f32
    %482 = vector.broadcast %cst_143 : f32 to vector<2x32xf32>
    %483 = arith.mulf %482, %481 : vector<2x32xf32>
    %cst_144 = arith.constant 5.000000e-01 : f32
    %484 = vector.broadcast %cst_144 : f32 to vector<2x32xf32>
    %485 = arith.addf %483, %484 : vector<2x32xf32>
    %486 = vector.extract_strided_slice %480 {offsets = [0, 32], sizes = [2, 32], strides = [1, 1]} : vector<2x128xf32> to vector<2x32xf32>
    %cst_145 = arith.constant 5.000000e-01 : f32
    %487 = vector.broadcast %cst_145 : f32 to vector<2x32xf32>
    %488 = arith.mulf %487, %486 : vector<2x32xf32>
    %cst_146 = arith.constant 5.000000e-01 : f32
    %489 = vector.broadcast %cst_146 : f32 to vector<2x32xf32>
    %490 = arith.addf %488, %489 : vector<2x32xf32>
    %491 = vector.extract_strided_slice %480 {offsets = [0, 64], sizes = [2, 32], strides = [1, 1]} : vector<2x128xf32> to vector<2x32xf32>
    %492 = vector.extract_strided_slice %480 {offsets = [0, 96], sizes = [2, 32], strides = [1, 1]} : vector<2x128xf32> to vector<2x32xf32>
    %cst_147 = arith.constant 5.000000e-01 : f32
    %493 = vector.broadcast %cst_147 : f32 to vector<2x32xf32>
    %494 = arith.mulf %493, %492 : vector<2x32xf32>
    %cst_148 = arith.constant 5.000000e-01 : f32
    %495 = vector.broadcast %cst_148 : f32 to vector<2x32xf32>
    %496 = arith.addf %494, %495 : vector<2x32xf32>
    %497 = arith.mulf %490, %462 : vector<2x32xf32>
    %498 = arith.mulf %485, %491 : vector<2x32xf32>
    %499 = arith.addf %497, %498 : vector<2x32xf32>
    %500 = math.tanh %499 : vector<2x32xf32>
    %501 = arith.mulf %496, %500 : vector<2x32xf32>
    %cst_149 = arith.constant dense<0.000000e+00> : vector<2x160xf32>
    %502 = tpu.matmul %501, %4, %cst_149 {dimension_numbers = #tpu.dot_dimension_numbers<[1], [0], [0], [1], [0, 0, 1, 1], [], []>} : vector<2x32xf32>, vector<32x160xf32>, vector<2x160xf32> -> vector<2x160xf32>
    %503 = vector.extract_strided_slice %502 {offsets = [0, 0], sizes = [2, 128], strides = [1, 1]} : vector<2x160xf32> to vector<2x128xf32>
    %504 = vector.extract_strided_slice %502 {offsets = [0, 128], sizes = [2, 32], strides = [1, 1]} : vector<2x160xf32> to vector<2x32xf32>
    %505 = vector.broadcast %3 : vector<1x32xf32> to vector<2x32xf32>
    %506 = arith.addf %504, %505 : vector<2x32xf32>
    %507 = vector.shape_cast %506 : vector<2x32xf32> to vector<2x1x32xf32>
    %c0_150 = arith.constant 0 : index
    %c6 = arith.constant 6 : index
    %c0_151 = arith.constant 0 : index
    %508 = vector.load %arg3[%c0_150, %c6, %c0_151] : memref<2x8x32xf32, #tpu.memory_space<vmem>>, vector<2x1x32xf32>
    tpu.vector_store %arg3[%c0_150, %c6, %c0_151], %507 {strides = array<i32>} : memref<2x8x32xf32, #tpu.memory_space<vmem>>, vector<2x1x32xf32>,
    %cst_152 = arith.constant dense<0xFF800000> : vector<2xf32>
    %509 = vector.multi_reduction <maximumf>, %506, %cst_152 [1] : vector<2x32xf32> to vector<2xf32>
    %510 = vector.shape_cast %509 : vector<2xf32> to vector<2x1xf32>
    %511 = vector.broadcast %510 : vector<2x1xf32> to vector<2x32xf32>
    %512 = arith.cmpf oeq, %506, %511 : vector<2x32xf32>
    %513 = arith.extui %512 : vector<2x32xi1> to vector<2x32xi32>
    %514 = arith.sitofp %513 : vector<2x32xi32> to vector<2x32xf32>
    %cst_153 = arith.constant dense<0.000000e+00> : vector<2x128xf32>
    %515 = tpu.matmul %514, %2, %cst_153 {dimension_numbers = #tpu.dot_dimension_numbers<[1], [0], [0], [1], [0, 0, 1, 1], [], []>} : vector<2x32xf32>, vector<32x128xf32>, vector<2x128xf32> -> vector<2x128xf32>
    %516 = arith.addf %515, %503 : vector<2x128xf32>
    %517 = math.tanh %516 : vector<2x128xf32>
    %518 = vector.extract_strided_slice %517 {offsets = [0, 0], sizes = [2, 32], strides = [1, 1]} : vector<2x128xf32> to vector<2x32xf32>
    %cst_154 = arith.constant 5.000000e-01 : f32
    %519 = vector.broadcast %cst_154 : f32 to vector<2x32xf32>
    %520 = arith.mulf %519, %518 : vector<2x32xf32>
    %cst_155 = arith.constant 5.000000e-01 : f32
    %521 = vector.broadcast %cst_155 : f32 to vector<2x32xf32>
    %522 = arith.addf %520, %521 : vector<2x32xf32>
    %523 = vector.extract_strided_slice %517 {offsets = [0, 32], sizes = [2, 32], strides = [1, 1]} : vector<2x128xf32> to vector<2x32xf32>
    %cst_156 = arith.constant 5.000000e-01 : f32
    %524 = vector.broadcast %cst_156 : f32 to vector<2x32xf32>
    %525 = arith.mulf %524, %523 : vector<2x32xf32>
    %cst_157 = arith.constant 5.000000e-01 : f32
    %526 = vector.broadcast %cst_157 : f32 to vector<2x32xf32>
    %527 = arith.addf %525, %526 : vector<2x32xf32>
    %528 = vector.extract_strided_slice %517 {offsets = [0, 64], sizes = [2, 32], strides = [1, 1]} : vector<2x128xf32> to vector<2x32xf32>
    %529 = vector.extract_strided_slice %517 {offsets = [0, 96], sizes = [2, 32], strides = [1, 1]} : vector<2x128xf32> to vector<2x32xf32>
    %cst_158 = arith.constant 5.000000e-01 : f32
    %530 = vector.broadcast %cst_158 : f32 to vector<2x32xf32>
    %531 = arith.mulf %530, %529 : vector<2x32xf32>
    %cst_159 = arith.constant 5.000000e-01 : f32
    %532 = vector.broadcast %cst_159 : f32 to vector<2x32xf32>
    %533 = arith.addf %531, %532 : vector<2x32xf32>
    %534 = arith.mulf %527, %499 : vector<2x32xf32>
    %535 = arith.mulf %522, %528 : vector<2x32xf32>
    %536 = arith.addf %534, %535 : vector<2x32xf32>
    %537 = math.tanh %536 : vector<2x32xf32>
    %538 = arith.mulf %533, %537 : vector<2x32xf32>
    %cst_160 = arith.constant dense<0.000000e+00> : vector<2x160xf32>
    %539 = tpu.matmul %538, %4, %cst_160 {dimension_numbers = #tpu.dot_dimension_numbers<[1], [0], [0], [1], [0, 0, 1, 1], [], []>} : vector<2x32xf32>, vector<32x160xf32>, vector<2x160xf32> -> vector<2x160xf32>
    %540 = vector.extract_strided_slice %539 {offsets = [0, 128], sizes = [2, 32], strides = [1, 1]} : vector<2x160xf32> to vector<2x32xf32>
    %541 = vector.broadcast %3 : vector<1x32xf32> to vector<2x32xf32>
    %542 = arith.addf %540, %541 : vector<2x32xf32>
    %543 = vector.shape_cast %542 : vector<2x32xf32> to vector<2x1x32xf32>
    %c0_161 = arith.constant 0 : index
    %c7 = arith.constant 7 : index
    %c0_162 = arith.constant 0 : index
    %544 = vector.load %arg3[%c0_161, %c7, %c0_162] : memref<2x8x32xf32, #tpu.memory_space<vmem>>, vector<2x1x32xf32>
    tpu.vector_store %arg3[%c0_161, %c7, %c0_162], %543 {strides = array<i32>} : memref<2x8x32xf32, #tpu.memory_space<vmem>>, vector<2x1x32xf32>,
    return
  }
}

</mosaic_0001>

<bundles_post_ra>
// kernel: seq2seq_forward.1
= control target key start
LH: loop header
LB: loop body
LE: loop exit
PB: predicated region body
PF: predicated region fallthrough
CT: control target
= control target key end

     0   :  { %8 = vsyncpa [#allocation3], 0  ;;  %s4562_s0 = inlined_call_operand.hbm [shape: s32[2,8], index: 0, kind: input, shape index: {}]   ;;  %s4563_s1 = inlined_call_operand.hbm [shape: f32[104,128], index: 1, kind: input, shape index: {}]   ;;  %s4564_s2 = inlined_call_operand.hbm [shape: f32[32,160], index: 2, kind: input, shape index: {}]   ;;  %s4565_s3 = inlined_call_operand.hbm [shape: f32[2,8,32], index: 3, kind: output, shape index: {}]  }
   0x1   :  { %9 = vsyncpa [#allocation6], 0 }
   0x2   :  { %10 = vsyncpa [#allocation4], 0  ;;  %s4057_s12 = smov [#allocation5]   ;;  %s3963_s16 = scalar_lea.hbm %s4563_s1, 1664 }
   0x3   :  { %s26_s13 = sshll.u32 %s4057_s12, 4  ;;  %p3964_p0 = scmp.ne.s32.totalorder %s4563_s1, %s3963_s16  ;;  %s27_s13 = int_to_ptr.vmem [resolvable:$true] %s26_s13 }
   0x4   :  { %p3967_p1 = scmp.lt.u32.totalorder %s3963_s16, %s4563_s1 }
   0x6   :  { %p3969_p2 = pnand %p3967_p1, %p3964_p0 }
   0x8   :  { %3972 = shalt.err (!%p3969_p2)
}
   0x9   :  { %s3973_s21 = scalar_lea.vmem %s27_s13, 1664  ;;  %p3978_p4 = scmp.lt.s32.totalorder %s27_s13, %s27_s13 }
   0xa   :  { %p3974_p3 = scmp.ne.s32.totalorder %s27_s13, %s3973_s21  ;;  %p3979_p5 = scmp.lt.s32.totalorder %s3973_s21, %s3973_s21 }
   0xc   :  { %p3980_p6 = por %p3979_p5, %p3978_p4 }
   0xe   :  { %p3981_p7 = pnand %p3980_p6, %p3974_p3 }
  0x10   :  { %3984 = shalt.err (!%p3981_p7)
}
  0x11   :  { %s4058_s22 = smov 128   ;;  %s4059_s23 = smov 8  }
  0x12   :  { %32 = dma.hbm_to_vmem [thread:$0]  %s4563_s1, 1664, %s27_s13, [#allocation6], %s4058_s22, %s4058_s22, %s4059_s23  }
  0x13   :  { %s4060_s26 = smov [#allocation2]   ;;  %s4061_s28 = smov [#allocation7]  }
  0x14   :  { %s17_s27 = sshll.u32 %s4060_s26, 4  ;;  %s38_s29 = sshll.u32 %s4061_s28, 4  ;;  %s18_s27 = int_to_ptr.vmem [resolvable:$true] %s17_s27  ;;  %s39_s29 = int_to_ptr.vmem [resolvable:$true] %s38_s29 }
  0x15   :  { %s3985_s5 = scalar_lea.hbm %s4562_s0, 32 }
  0x16   :  { %p3986_p8 = scmp.ne.s32.totalorder %s4562_s0, %s3985_s5  ;;  %p3989_p9 = scmp.lt.u32.totalorder %s3985_s5, %s4562_s0 }
  0x18   :  { %p3991_p10 = pnand %p3989_p9, %p3986_p8 }
  0x1a   :  { %3994 = shalt.err (!%p3991_p10)
}
  0x1b   :  { %s3995_s1 = scalar_lea.vmem %s18_s27, 32  ;;  %p4000_p12 = scmp.lt.s32.totalorder %s18_s27, %s18_s27 }
  0x1c   :  { %p3996_p11 = scmp.ne.s32.totalorder %s18_s27, %s3995_s1  ;;  %p4001_p13 = scmp.lt.s32.totalorder %s3995_s1, %s3995_s1 }
  0x1e   :  { %p4002_p0 = por %p4001_p13, %p4000_p12 }
  0x20   :  { %p4003_p1 = pnand %p4002_p0, %p3996_p11 }
  0x22   :  { %4006 = shalt.err (!%p4003_p1)
}
  0x23   :  { %20 = dma.hbm_to_vmem [thread:$0]  %s4562_s0, 32, %s18_s27, [#allocation3]  }
  0x24   :  { %s4007_s14 = scalar_lea.hbm %s4564_s2, 1024 }
  0x25   :  { %p4008_p2 = scmp.ne.s32.totalorder %s4564_s2, %s4007_s14  ;;  %p4011_p3 = scmp.lt.u32.totalorder %s4007_s14, %s4564_s2 }
  0x27   :  { %p4013_p4 = pnand %p4011_p3, %p4008_p2 }
  0x29   :  { %4016 = shalt.err (!%p4013_p4)
}
  0x2a   :  { %s4017_s19 = scalar_lea.vmem %s39_s29, 1024  ;;  %p4022_p6 = scmp.lt.s32.totalorder %s39_s29, %s39_s29 }
  0x2b   :  { %p4018_p5 = scmp.ne.s32.totalorder %s39_s29, %s4017_s19  ;;  %p4023_p7 = scmp.lt.s32.totalorder %s4017_s19, %s4017_s19 }
  0x2d   :  { %p4024_p8 = por %p4023_p7, %p4022_p6 }
  0x2f   :  { %p4025_p9 = pnand %p4024_p8, %p4018_p5 }
  0x31   :  { %4028 = shalt.err (!%p4025_p9)
}
  0x32   :  { %s4062_s0 = smov 256   ;;  %s4063_s20 = smov 16  }
  0x33   :  { %44 = dma.hbm_to_vmem [thread:$0]  %s4564_s2, 1024, %s39_s29, [#allocation6], %s4062_s0, %s4062_s0, %s4063_s20  }
  0x34   :  { %4051 = dma.done.wait [#allocation3], 32  }
  0x35   :  { %4052 = vsyncadd [#allocation3], 4294967264 }
  0x36   :  { %4053 = dma.done.wait [#allocation6], 2688  }
  0x37   :  { %4054 = vsyncadd [#allocation6], 4294964608  ;;  %v4064_v0 = vmov 0   ;;  %v4065_v1 = vmov 0.0|0.0   ;;  %vm4066_vm0 = vmmov 0   ;;  %v4067_v2 = vmov 0.0  }
  0x38   :  { %3891 = vset.pattern.permute.xlu0 %v4064_v0  ;;  %3637 = vmatprep.subr.bf16.mxu0 %v4065_v1  ;;  %v4144_v3 = vld [vmem:[#allocation2] sm:$0x3]  ;;  %v58_v4 = vld [vmem:[#allocation5 + $0x20] sm:$0xff]  ;;  %v59_v5 = vld [vmem:[#allocation5 + $0x28] sm:$0xff]  ;;  %v75_v16 = vlaneseq  ;;  %vm84_vm1 = vcmask 261120   ;;  %s4068_s2 = smov 64  }
  0x39   :  { %3370 = vmatprep.mubr.msk.f32.mxu0 %vm4066_vm0, %v4067_v2  ;;  %3649 = vmatprep.subr.bf16.mxu1 %v4065_v1  ;;  %v4147_v6 = vpack.c.bf16 %v59_v5, %v58_v4  ;;  %v60_v7 = vld [vmem:[#allocation5 + $0x30] sm:$0xff]  ;;  %v61_v8 = vld [vmem:[#allocation5 + $0x38] sm:$0xff]  ;;  %v54_v10 = vld [vmem:[#allocation5] sm:$0xff]  ;;  %s4069_s25 = smov 32   ;;  %v4070_v27 = vmov 1   ;;  %v4071_v44 = vmov 2  }
  0x3a   :  { %3392 = vmatprep.mubr.msk.f32.mxu1 %vm4066_vm0, %v4067_v2  ;;  %79 = vperm.xlu0 %3891, %v4144_v3   ;;  %v4150_v9 = vpack.c.bf16 %v61_v8, %v60_v7  ;;  %v55_v11 = vld [vmem:[#allocation5 + $0x8] sm:$0xff]  ;;  %v56_v13 = vld [vmem:[#allocation5 + $0x10] sm:$0xff]  ;;  %v57_v14 = vld [vmem:[#allocation5 + $0x18] sm:$0xff]  ;;  %v4171_v17 = vand.u32 127, %v75_v16  ;;  %v4072_v61 = vmov 3   ;;  %vm1749_vm11 = vcmask 254976  }
  0x3b   :  { %3639 = vmatpush3.bf16.msra.mxu0 %v4147_v6  ;;  %3651 = vmatpush3.bf16.msra.mxu1 %v4147_v6  ;;  %v4156_v12 = vpack.c.bf16 %v55_v11, %v54_v10  ;;  %v4163_v15 = vpack.c.bf16 %v57_v14, %v56_v13  ;;  %vm1746_vm12 = vcmask 253952   ;;  %s4078_s26 = smov [#allocation8]  }
  0x3c   :  { %3640 = vmatprep.subr.bf16.mxu0 %v4065_v1  ;;  %3652 = vmatprep.subr.bf16.mxu1 %v4065_v1  ;;  %vm1469_vm10 = vcmp.eq.s32.totalorder %v4171_v17, 1  ;;  %s3175_s27 = sshll.u32 %s4078_s26, 4  ;;  %s3176_s27 = int_to_ptr.vmem [resolvable:$true] %s3175_s27 }
  0x3d   :  { %s4029_s28 = scalar_lea.vmem %s3176_s27, 256  ;;  %p4034_p11 = scmp.lt.s32.totalorder %s3176_s27, %s3176_s27 }
  0x3e   :  { %3892 = vset.pattern.permute.xlu0 %v4070_v27  ;;  %p4030_p10 = scmp.ne.s32.totalorder %s3176_s27, %s4029_s28  ;;  %p4035_p12 = scmp.lt.s32.totalorder %s4029_s28, %s4029_s28 }
  0x3f   :  { %3642 = vmatpush3.bf16.msra.mxu0 %v4150_v9  ;;  %3654 = vmatpush3.bf16.msra.mxu1 %v4150_v9 }
  0x40   :  { %3643 = vmatprep.subr.bf16.mxu0 %v4065_v1  ;;  %3655 = vmatprep.subr.bf16.mxu1 %v4065_v1  ;;  %p4036_p13 = por %p4035_p12, %p4034_p11 }
  0x42   :  { %3371 = vmatmul.mubr.f32.vlgmr.msra.gmra.mrb[0].mxu0 %v4067_v2  ;;  %p4037_p0 = pnand %p4036_p13, %p4030_p10 }
  0x43   :  { %3645 = vmatpush3.bf16.msra.mxu0 %v4156_v12  ;;  %3381 = vmatprep.mubr.msk.f32.mxu0 %vm4066_vm0, %v4067_v2 }
  0x44   :  { %3646 = vmatprep.subr.bf16.mxu0 %v4065_v1 }
  0x47   :  { %3648 = vmatpush3.bf16.msra.mxu0 %v4163_v15 }
  0x48   :  { %3661 = vmatprep.subr.bf16.mxu0 %v4065_v1 }
  0xb9   :  { %v80_v18 = vpop.permute.xlu0 %79 }
  0xba   :  { %vm81_vm2 = vcmp.eq.s32.totalorder %v4171_v17, %v80_v18 }
  0xbb   :  { %v3188_v19 = vsel %vm81_vm2, 1.0, %v4067_v2 }
  0xbc   :  { %3382 = vmatmul.mubr.msk.f32.vlgmr.msra.gmra.mrb[0].mxu0 %vm84_vm1, %v3188_v19 }
  0xbd   :  { %3663 = vmatpush3.bf16.msra.mxu0 %v4147_v6  ;;  %3414 = vmatprep.mubr.msk.f32.mxu0 %vm4066_vm0, %v4067_v2 }
  0xbe   :  { %3664 = vmatprep.subr.bf16.mxu0 %v4065_v1 }
  0xc1   :  { %3666 = vmatpush3.bf16.msra.mxu0 %v4150_v9 }
  0xc2   :  { %3667 = vmatprep.subr.bf16.mxu0 %v4065_v1 }
 0x18f   :  { %v227_v20 = vpop.f32.mrb[0].mxu0 }
 0x190   :  { %3899 = vtanh.f32 %v227_v20  ;;  %v3383_v21 = vpop.f32.mrb[1].mxu0 }
 0x19a   :  { %v3900_v22 = vpop.eup %3899 }
 0x19b   :  { %236 = vrot.lane.b32.xlu0 %v3900_v22, %s4068_s2  ;;  %v232_v23 = vmul.f32 0.5, %v3900_v22 }
 0x19d   :  { %v233_v24 = vadd.f32 0.5, %v232_v23  ;;  %v4073_v23 = vmov 4  }
 0x19f   :  { %252 = vperm.xlu0 %3892, %v4144_v3   ;;  %v234_v28 = vmul.f32 0.0, %v233_v24 }
 0x1a3   :  { %3893 = vset.pattern.permute.xlu0 %v4071_v44 }
 0x20d   :  { %v237_v25 = vpop.permute.xlu0 %236 }
 0x20e   :  { %v239_v26 = vmul.f32 %v237_v25, %v233_v24 }
 0x210   :  { %241 = vrot.lane.b32.xlu1 %v239_v26, %s4069_s25 }
 0x21e   :  { %v253_v35 = vpop.permute.xlu0 %252 }
 0x21f   :  { %vm254_vm3 = vcmp.eq.s32.totalorder %v4171_v17, %v253_v35 }
 0x220   :  { %v3190_v36 = vsel %vm254_vm3, 1.0, %v4067_v2 }
 0x282   :  { %v242_v29 = vpop.permute.xlu1 %241 }
 0x283   :  { %v244_v30 = vadd.f32 %v242_v29, %v234_v28 }
 0x285   :  { %3901 = vtanh.f32 %v244_v30 }
 0x28f   :  { %v3902_v31 = vpop.eup %3901 }
 0x290   :  { %247 = vrot.lane.b32.xlu1 %v3902_v31, %s4068_s2 }
 0x302   :  { %v248_v32 = vpop.permute.xlu1 %247 }
 0x303   :  { %v250_v33 = vmul.f32 %v248_v32, %v233_v24 }
 0x305   :  { %258 = vrot.lane.b32.xlu1 %v250_v33, %s4069_s25 }
 0x377   :  { %v259_v34 = vpop.permute.xlu1 %258 }
 0x378   :  { %3393 = vmatmul.mubr.msk.f32.vlgmr.msra.gmra.mrb[0].mxu1 %vm84_vm1, %v259_v34 }
 0x379   :  { %3657 = vmatpush3.bf16.msra.mxu1 %v4156_v12  ;;  %3403 = vmatprep.mubr.msk.f32.mxu1 %vm4066_vm0, %v4067_v2 }
 0x37a   :  { %3658 = vmatprep.subr.bf16.mxu1 %v4065_v1 }
 0x37d   :  { %3660 = vmatpush3.bf16.msra.mxu1 %v4163_v15 }
 0x37e   :  { %3673 = vmatprep.subr.bf16.mxu1 %v4065_v1 }
 0x380   :  { %3404 = vmatmul.mubr.msk.f32.vlgmr.msra.gmra.mrb[0].mxu1 %vm84_vm1, %v3190_v36 }
 0x381   :  { %3675 = vmatpush3.bf16.msra.mxu1 %v4147_v6  ;;  %3436 = vmatprep.mubr.msk.f32.mxu1 %vm4066_vm0, %v4067_v2 }
 0x382   :  { %3676 = vmatprep.subr.bf16.mxu1 %v4065_v1 }
 0x385   :  { %3678 = vmatpush3.bf16.msra.mxu1 %v4150_v9 }
 0x386   :  { %3679 = vmatprep.subr.bf16.mxu1 %v4065_v1 }
 0x453   :  { %v401_v37 = vpop.f32.mrb[0].mxu1 }
 0x454   :  { %3903 = vtanh.f32 %v401_v37  ;;  %v3405_v38 = vpop.f32.mrb[1].mxu1 }
 0x45e   :  { %v3904_v39 = vpop.eup %3903 }
 0x45f   :  { %410 = vrot.lane.b32.xlu1 %v3904_v39, %s4068_s2  ;;  %v406_v40 = vmul.f32 0.5, %v3904_v39 }
 0x461   :  { %v407_v41 = vadd.f32 0.5, %v406_v40  ;;  %v4074_v40 = vmov 5  }
 0x463   :  { %v408_v45 = vmul.f32 %v407_v41, %v244_v30 }
 0x4d1   :  { %v411_v42 = vpop.permute.xlu1 %410 }
 0x4d2   :  { %v413_v43 = vmul.f32 %v411_v42, %v407_v41 }
 0x4d4   :  { %415 = vrot.lane.b32.xlu0 %v413_v43, %s4069_s25 }
 0x4d8   :  { %426 = vperm.xlu0 %3893, %v4144_v3  }
 0x4dc   :  { %3894 = vset.pattern.permute.xlu0 %v4072_v61 }
 0x546   :  { %v416_v46 = vpop.permute.xlu0 %415 }
 0x547   :  { %v418_v47 = vadd.f32 %v416_v46, %v408_v45 }
 0x549   :  { %3905 = vtanh.f32 %v418_v47 }
 0x553   :  { %v3906_v48 = vpop.eup %3905 }
 0x554   :  { %421 = vrot.lane.b32.xlu1 %v3906_v48, %s4068_s2 }
 0x557   :  { %v427_v52 = vpop.permute.xlu0 %426 }
 0x558   :  { %vm428_vm4 = vcmp.eq.s32.totalorder %v4171_v17, %v427_v52 }
 0x559   :  { %v3193_v53 = vsel %vm428_vm4, 1.0, %v4067_v2 }
 0x5c6   :  { %v422_v49 = vpop.permute.xlu1 %421 }
 0x5c7   :  { %v424_v50 = vmul.f32 %v422_v49, %v407_v41 }
 0x5c9   :  { %432 = vrot.lane.b32.xlu1 %v424_v50, %s4069_s25 }
 0x63b   :  { %v433_v51 = vpop.permute.xlu1 %432 }
 0x63c   :  { %3415 = vmatmul.mubr.msk.f32.vlgmr.msra.gmra.mrb[2].mxu0 %vm84_vm1, %v433_v51 }
 0x63d   :  { %3669 = vmatpush3.bf16.msra.mxu0 %v4156_v12  ;;  %3425 = vmatprep.mubr.msk.f32.mxu0 %vm4066_vm0, %v4067_v2 }
 0x63e   :  { %3670 = vmatprep.subr.bf16.mxu0 %v4065_v1 }
 0x641   :  { %3672 = vmatpush3.bf16.msra.mxu0 %v4163_v15 }
 0x642   :  { %3685 = vmatprep.subr.bf16.mxu0 %v4065_v1 }
 0x644   :  { %3426 = vmatmul.mubr.msk.f32.vlgmr.msra.gmra.mrb[2].mxu0 %vm84_vm1, %v3193_v53 }
 0x645   :  { %3687 = vmatpush3.bf16.msra.mxu0 %v4147_v6  ;;  %3458 = vmatprep.mubr.msk.f32.mxu0 %vm4066_vm0, %v4067_v2 }
 0x646   :  { %3688 = vmatprep.subr.bf16.mxu0 %v4065_v1 }
 0x649   :  { %3690 = vmatpush3.bf16.msra.mxu0 %v4150_v9 }
 0x64a   :  { %3691 = vmatprep.subr.bf16.mxu0 %v4065_v1 }
 0x717   :  { %v575_v54 = vpop.f32.mrb[2].mxu0 }
 0x718   :  { %3907 = vtanh.f32 %v575_v54  ;;  %v3427_v55 = vpop.f32.mrb[3].mxu0 }
 0x722   :  { %v3908_v56 = vpop.eup %3907 }
 0x723   :  { %584 = vrot.lane.b32.xlu1 %v3908_v56, %s4068_s2  ;;  %v580_v57 = vmul.f32 0.5, %v3908_v56 }
 0x725   :  { %v581_v58 = vadd.f32 0.5, %v580_v57 }
 0x727   :  { %v582_v62 = vmul.f32 %v581_v58, %v418_v47 }
 0x795   :  { %v585_v59 = vpop.permute.xlu1 %584 }
 0x796   :  { %v587_v60 = vmul.f32 %v585_v59, %v581_v58 }
 0x798   :  { %589 = vrot.lane.b32.xlu0 %v587_v60, %s4069_s25 }
 0x79c   :  { %600 = vperm.xlu0 %3894, %v4144_v3  }
 0x7a0   :  { %3895 = vset.pattern.permute.xlu0 %v4073_v23 }
 0x80a   :  { %v590_v63 = vpop.permute.xlu0 %589 }
 0x80b   :  { %v592_v0 = vadd.f32 %v590_v63, %v582_v62 }
 0x80d   :  { %3909 = vtanh.f32 %v592_v0 }
 0x817   :  { %v3910_v4 = vpop.eup %3909 }
 0x818   :  { %595 = vrot.lane.b32.xlu1 %v3910_v4, %s4068_s2 }
 0x81b   :  { %v601_v10 = vpop.permute.xlu0 %600 }
 0x81c   :  { %vm602_vm5 = vcmp.eq.s32.totalorder %v4171_v17, %v601_v10 }
 0x81d   :  { %v3196_v11 = vsel %vm602_vm5, 1.0, %v4067_v2 }
 0x88a   :  { %v596_v5 = vpop.permute.xlu1 %595 }
 0x88b   :  { %v598_v7 = vmul.f32 %v596_v5, %v581_v58 }
 0x88d   :  { %606 = vrot.lane.b32.xlu1 %v598_v7, %s4069_s25 }
 0x8ff   :  { %v607_v8 = vpop.permute.xlu1 %606 }
 0x900   :  { %3437 = vmatmul.mubr.msk.f32.vlgmr.msra.gmra.mrb[2].mxu1 %vm84_vm1, %v607_v8 }
 0x901   :  { %3681 = vmatpush3.bf16.msra.mxu1 %v4156_v12  ;;  %3447 = vmatprep.mubr.msk.f32.mxu1 %vm4066_vm0, %v4067_v2 }
 0x902   :  { %3682 = vmatprep.subr.bf16.mxu1 %v4065_v1 }
 0x905   :  { %3684 = vmatpush3.bf16.msra.mxu1 %v4163_v15 }
 0x906   :  { %3697 = vmatprep.subr.bf16.mxu1 %v4065_v1 }
 0x908   :  { %3448 = vmatmul.mubr.msk.f32.vlgmr.msra.gmra.mrb[2].mxu1 %vm84_vm1, %v3196_v11 }
 0x909   :  { %3699 = vmatpush3.bf16.msra.mxu1 %v4147_v6  ;;  %3480 = vmatprep.mubr.msk.f32.mxu1 %vm4066_vm0, %v4067_v2 }
 0x90a   :  { %3700 = vmatprep.subr.bf16.mxu1 %v4065_v1 }
 0x90d   :  { %3702 = vmatpush3.bf16.msra.mxu1 %v4150_v9 }
 0x90e   :  { %3703 = vmatprep.subr.bf16.mxu1 %v4065_v1 }
 0x9db   :  { %v749_v13 = vpop.f32.mrb[2].mxu1 }
 0x9dc   :  { %3911 = vtanh.f32 %v749_v13  ;;  %v3449_v14 = vpop.f32.mrb[3].mxu1 }
 0x9dd   :  { %v4076_v14 = vmov 7  }
 0x9e6   :  { %v3912_v18 = vpop.eup %3911 }
 0x9e7   :  { %758 = vrot.lane.b32.xlu1 %v3912_v18, %s4068_s2  ;;  %v754_v19 = vmul.f32 0.5, %v3912_v18 }
 0x9e9   :  { %v755_v20 = vadd.f32 0.5, %v754_v19 }
 0x9eb   :  { %v756_v24 = vmul.f32 %v755_v20, %v592_v0 }
 0xa59   :  { %v759_v21 = vpop.permute.xlu1 %758 }
 0xa5a   :  { %v761_v22 = vmul.f32 %v759_v21, %v755_v20 }
 0xa5c   :  { %763 = vrot.lane.b32.xlu0 %v761_v22, %s4069_s25 }
 0xa60   :  { %774 = vperm.xlu0 %3895, %v4144_v3  }
 0xa64   :  { %3896 = vset.pattern.permute.xlu0 %v4074_v40 }
 0xace   :  { %v764_v25 = vpop.permute.xlu0 %763 }
 0xacf   :  { %v766_v26 = vadd.f32 %v764_v25, %v756_v24 }
 0xad1   :  { %3913 = vtanh.f32 %v766_v26 }
 0xadb   :  { %v3914_v27 = vpop.eup %3913 }
 0xadc   :  { %769 = vrot.lane.b32.xlu1 %v3914_v27, %s4068_s2 }
 0xadf   :  { %v775_v31 = vpop.permute.xlu0 %774 }
 0xae0   :  { %vm776_vm6 = vcmp.eq.s32.totalorder %v4171_v17, %v775_v31 }
 0xae1   :  { %v3199_v32 = vsel %vm776_vm6, 1.0, %v4067_v2 }
 0xb4e   :  { %v770_v28 = vpop.permute.xlu1 %769 }
 0xb4f   :  { %v772_v29 = vmul.f32 %v770_v28, %v755_v20 }
 0xb51   :  { %780 = vrot.lane.b32.xlu1 %v772_v29, %s4069_s25 }
 0xbc3   :  { %v781_v30 = vpop.permute.xlu1 %780 }
 0xbc4   :  { %3459 = vmatmul.mubr.msk.f32.vlgmr.msra.gmra.mrb[4].mxu0 %vm84_vm1, %v781_v30 }
 0xbc5   :  { %3693 = vmatpush3.bf16.msra.mxu0 %v4156_v12  ;;  %3469 = vmatprep.mubr.msk.f32.mxu0 %vm4066_vm0, %v4067_v2 }
 0xbc6   :  { %3694 = vmatprep.subr.bf16.mxu0 %v4065_v1 }
 0xbc9   :  { %3696 = vmatpush3.bf16.msra.mxu0 %v4163_v15 }
 0xbca   :  { %3709 = vmatprep.subr.bf16.mxu0 %v4065_v1 }
 0xbcc   :  { %3470 = vmatmul.mubr.msk.f32.vlgmr.msra.gmra.mrb[4].mxu0 %vm84_vm1, %v3199_v32 }
 0xbcd   :  { %3711 = vmatpush3.bf16.msra.mxu0 %v4147_v6  ;;  %3502 = vmatprep.mubr.msk.f32.mxu0 %vm4066_vm0, %v4067_v2 }
 0xbce   :  { %3712 = vmatprep.subr.bf16.mxu0 %v4065_v1 }
 0xbd1   :  { %3714 = vmatpush3.bf16.msra.mxu0 %v4150_v9 }
 0xbd2   :  { %3715 = vmatprep.subr.bf16.mxu0 %v4065_v1 }
 0xc9f   :  { %v923_v33 = vpop.f32.mrb[4].mxu0 }
 0xca0   :  { %3915 = vtanh.f32 %v923_v33  ;;  %v3471_v34 = vpop.f32.mrb[5].mxu0 }
 0xca1   :  { %v67_v34 = vld [vmem:[#allocation7] sm:$0xff] }
 0xcaa   :  { %v3916_v35 = vpop.eup %3915 }
 0xcab   :  { %932 = vrot.lane.b32.xlu1 %v3916_v35, %s4068_s2  ;;  %v928_v36 = vmul.f32 0.5, %v3916_v35  ;;  %v69_v35 = vld [vmem:[#allocation7 + $0x10] sm:$0xff] }
 0xcad   :  { %v929_v37 = vadd.f32 0.5, %v928_v36  ;;  %v71_v36 = vld [vmem:[#allocation7 + $0x20] sm:$0xff] }
 0xcaf   :  { %v930_v41 = vmul.f32 %v929_v37, %v766_v26 }
 0xd1d   :  { %v933_v38 = vpop.permute.xlu1 %932 }
 0xd1e   :  { %v935_v39 = vmul.f32 %v933_v38, %v929_v37  ;;  %v73_v38 = vld [vmem:[#allocation7 + $0x30] sm:$0xff] }
 0xd20   :  { %937 = vrot.lane.b32.xlu0 %v935_v39, %s4069_s25  ;;  %v4324_v39 = vpack.c.bf16 %v73_v38, %v71_v36 }
 0xd24   :  { %948 = vperm.xlu0 %3896, %v4144_v3  }
 0xd92   :  { %v938_v42 = vpop.permute.xlu0 %937 }
 0xd93   :  { %v940_v43 = vadd.f32 %v938_v42, %v930_v41 }
 0xd95   :  { %3917 = vtanh.f32 %v940_v43 }
 0xd9f   :  { %v3918_v44 = vpop.eup %3917 }
 0xda0   :  { %943 = vrot.lane.b32.xlu1 %v3918_v44, %s4068_s2  ;;  %v63_v44 = vld [vmem:[#allocation5 + $0x48] sm:$0xff] }
 0xda3   :  { %v949_v48 = vpop.permute.xlu0 %948 }
 0xda4   :  { %vm950_vm7 = vcmp.eq.s32.totalorder %v4171_v17, %v949_v48 }
 0xda5   :  { %v3202_v49 = vsel %vm950_vm7, 1.0, %v4067_v2 }
 0xe12   :  { %v944_v45 = vpop.permute.xlu1 %943 }
 0xe13   :  { %v946_v46 = vmul.f32 %v944_v45, %v929_v37  ;;  %v4321_v37 = vpack.c.bf16 %v69_v35, %v67_v34 }
 0xe15   :  { %954 = vrot.lane.b32.xlu1 %v946_v46, %s4069_s25  ;;  %v64_v46 = vld [vmem:[#allocation5 + $0x50] sm:$0xff] }
 0xe87   :  { %v955_v47 = vpop.permute.xlu1 %954 }
 0xe88   :  { %3481 = vmatmul.mubr.msk.f32.vlgmr.msra.gmra.mrb[4].mxu1 %vm84_vm1, %v955_v47  ;;  %v65_v47 = vld [vmem:[#allocation5 + $0x58] sm:$0xff] }
 0xe89   :  { %3705 = vmatpush3.bf16.msra.mxu1 %v4156_v12  ;;  %3491 = vmatprep.mubr.msk.f32.mxu1 %vm4066_vm0, %v4067_v2 }
 0xe8a   :  { %3706 = vmatprep.subr.bf16.mxu1 %v4065_v1 }
 0xe8d   :  { %3708 = vmatpush3.bf16.msra.mxu1 %v4163_v15 }
 0xe8e   :  { %3721 = vmatprep.subr.bf16.mxu1 %v4065_v1 }
 0xe90   :  { %3492 = vmatmul.mubr.msk.f32.vlgmr.msra.gmra.mrb[4].mxu1 %vm84_vm1, %v3202_v49  ;;  %v4335_v49 = vpack.c.bf16 %v65_v47, %v64_v46 }
 0xe91   :  { %3723 = vmatpush3.bf16.msra.mxu1 %v4147_v6  ;;  %3524 = vmatprep.mubr.msk.f32.mxu1 %vm4066_vm0, %v4067_v2  ;;  %v4075_v6 = vmov 6  }
 0xe92   :  { %3724 = vmatprep.subr.bf16.mxu1 %v4065_v1  ;;  %3897 = vset.pattern.permute.xlu0 %v4075_v6 }
 0xe95   :  { %3726 = vmatpush3.bf16.msra.mxu1 %v4150_v9 }
 0xe96   :  { %3727 = vmatprep.subr.bf16.mxu1 %v4065_v1 }
 0xf63   :  { %v1097_v50 = vpop.f32.mrb[4].mxu1 }
 0xf64   :  { %3919 = vtanh.f32 %v1097_v50  ;;  %v3493_v51 = vpop.f32.mrb[5].mxu1  ;;  %v3211_v50 = vsel %vm1469_vm10, 1.0, %v4067_v2 }
 0xf6e   :  { %v3920_v52 = vpop.eup %3919 }
 0xf6f   :  { %1106 = vrot.lane.b32.xlu1 %v3920_v52, %s4068_s2  ;;  %v1102_v53 = vmul.f32 0.5, %v3920_v52 }
 0xf71   :  { %v1103_v54 = vadd.f32 0.5, %v1102_v53 }
 0xf73   :  { %v1104_v57 = vmul.f32 %v1103_v54, %v940_v43  ;;  %v62_v43 = vld [vmem:[#allocation5 + $0x40] sm:$0xff] }
 0xf74   :  { %v4331_v45 = vpack.c.bf16 %v63_v44, %v62_v43 }
 0xfe1   :  { %v1107_v55 = vpop.permute.xlu1 %1106 }
 0xfe2   :  { %v1109_v56 = vmul.f32 %v1107_v55, %v1103_v54 }
 0xfe4   :  { %1111 = vrot.lane.b32.xlu0 %v1109_v56, %s4069_s25 }
 0xfe8   :  { %1122 = vperm.xlu0 %3897, %v4144_v3  }
 0xfec   :  { %3898 = vset.pattern.permute.xlu0 %v4076_v14  ;;  %v4374_v14 = vld [vmem:[#allocation5 + $0x60] ss:$0 sm:$0xff] }
0x1056   :  { %v1112_v9 = vpop.permute.xlu0 %1111 }
0x1057   :  { %v1114_v58 = vadd.f32 %v1112_v9, %v1104_v57 }
0x1059   :  { %3921 = vtanh.f32 %v1114_v58 }
0x1063   :  { %v3922_v59 = vpop.eup %3921 }
0x1064   :  { %1117 = vrot.lane.b32.xlu1 %v3922_v59, %s4068_s2  ;;  %v70_v59 = vld [vmem:[#allocation7 + $0x18] sm:$0xff] }
0x1067   :  { %v1123_v63 = vpop.permute.xlu0 %1122 }
0x1068   :  { %vm1124_vm8 = vcmp.eq.s32.totalorder %v4171_v17, %v1123_v63 }
0x1069   :  { %v3205_v0 = vsel %vm1124_vm8, 1.0, %v4067_v2 }
0x10d6   :  { %v1118_v60 = vpop.permute.xlu1 %1117 }
0x10d7   :  { %v1120_v61 = vmul.f32 %v1118_v60, %v1103_v54  ;;  %v72_v60 = vld [vmem:[#allocation7 + $0x28] sm:$0xff] }
0x10d9   :  { %1128 = vrot.lane.b32.xlu1 %v1120_v61, %s4069_s25 }
0x114b   :  { %v1129_v62 = vpop.permute.xlu1 %1128 }
0x114c   :  { %3503 = vmatmul.mubr.msk.f32.vlgmr.msra.gmra.mrb[6].mxu0 %vm84_vm1, %v1129_v62  ;;  %v74_v62 = vld [vmem:[#allocation7 + $0x38] sm:$0xff] }
0x114d   :  { %3717 = vmatpush3.bf16.msra.mxu0 %v4156_v12  ;;  %3513 = vmatprep.mubr.msk.f32.mxu0 %vm4066_vm0, %v4067_v2  ;;  %v4352_v63 = vpack.c.bf16 %v74_v62, %v72_v60 }
0x114e   :  { %3718 = vmatprep.subr.bf16.mxu0 %v4065_v1 }
0x1151   :  { %3720 = vmatpush3.bf16.msra.mxu0 %v4163_v15 }
0x1152   :  { %3733 = vmatprep.subr.bf16.mxu0 %v4065_v1 }
0x1154   :  { %3514 = vmatmul.mubr.msk.f32.vlgmr.msra.gmra.mrb[6].mxu0 %vm84_vm1, %v3205_v0 }
0x1155   :  { %3546 = vmatprep.mubr.msk.f32.mxu0 %vm4066_vm0, %v4067_v2  ;;  %3735 = vmatpush3.bf16.msra.mxu0 %v4321_v37 }
0x1156   :  { %3736 = vmatprep.subr.bf16.mxu0 %v4065_v1 }
0x1159   :  { %3738 = vmatpush3.bf16.msra.mxu0 %v4324_v39 }
0x115a   :  { %3739 = vmatprep.subr.bf16.mxu0 %v4065_v1 }
0x1227   :  { %v1271_v4 = vpop.f32.mrb[6].mxu0 }
0x1228   :  { %3923 = vtanh.f32 %v1271_v4  ;;  %v3515_v5 = vpop.f32.mrb[7].mxu0 }
0x1232   :  { %v3924_v7 = vpop.eup %3923 }
0x1233   :  { %1280 = vrot.lane.b32.xlu1 %v3924_v7, %s4068_s2  ;;  %v1276_v8 = vmul.f32 0.5, %v3924_v7 }
0x1235   :  { %v1277_v10 = vadd.f32 0.5, %v1276_v8  ;;  %v4077_v8 = vmov 1966171168  }
0x1237   :  { %v1278_v18 = vmul.f32 %v1277_v10, %v1114_v58  ;;  %v68_v58 = vld [vmem:[#allocation7 + $0x8] sm:$0xff] }
0x1238   :  { %v4350_v61 = vpack.c.bf16 %v70_v59, %v68_v58 }
0x12a5   :  { %v1281_v11 = vpop.permute.xlu1 %1280 }
0x12a6   :  { %v1283_v13 = vmul.f32 %v1281_v11, %v1277_v10 }
0x12a8   :  { %1285 = vrot.lane.b32.xlu0 %v1283_v13, %s4069_s25  ;;  %v1726_v13 = vshrl.u32 %v75_v16, 7 }
0x12ac   :  { %1296 = vperm.xlu0 %3898, %v4144_v3  }
0x131a   :  { %v1286_v19 = vpop.permute.xlu0 %1285 }
0x131b   :  { %v1288_v20 = vadd.f32 %v1286_v19, %v1278_v18 }
0x131d   :  { %3925 = vtanh.f32 %v1288_v20 }
0x1327   :  { %v3926_v21 = vpop.eup %3925 }
0x1328   :  { %1291 = vrot.lane.b32.xlu1 %v3926_v21, %s4068_s2 }
0x132b   :  { %v1297_v25 = vpop.permute.xlu0 %1296 }
0x132c   :  { %vm1298_vm9 = vcmp.eq.s32.totalorder %v4171_v17, %v1297_v25 }
0x132d   :  { %v3208_v3 = vsel %vm1298_vm9, 1.0, %v4067_v2 }
0x139a   :  { %v1292_v22 = vpop.permute.xlu1 %1291 }
0x139b   :  { %v1294_v23 = vmul.f32 %v1292_v22, %v1277_v10  ;;  %v1723_v10 = vunpack.c.l.s4 %v4077_v8 }
0x139d   :  { %1302 = vrot.lane.b32.xlu1 %v1294_v23, %s4069_s25  ;;  %v1724_v11 = vunpack.c.0.s8 %v1723_v10 }
0x139f   :  { %v4376_v18 = vsub.s32 %v1724_v11, %v1726_v13 }
0x140f   :  { %v1303_v24 = vpop.permute.xlu1 %1302 }
0x1410   :  { %3525 = vmatmul.mubr.msk.f32.vlgmr.msra.gmra.mrb[6].mxu1 %vm84_vm1, %v1303_v24 }
0x1411   :  { %3729 = vmatpush3.bf16.msra.mxu1 %v4156_v12  ;;  %3535 = vmatprep.mubr.msk.f32.mxu1 %vm4066_vm0, %v4067_v2 }
0x1412   :  { %3730 = vmatprep.subr.bf16.mxu1 %v4065_v1 }
0x1415   :  { %3732 = vmatpush3.bf16.msra.mxu1 %v4163_v15 }
0x1416   :  { %3746 = vmatprep.subr.bf16.mxu1 %v4350_v61 }
0x1418   :  { %3536 = vmatmul.mubr.msk.f32.vlgmr.msra.gmra.mrb[6].mxu1 %vm84_vm1, %v3208_v3 }
0x1419   :  { %1709 = vmatprep.mubr.f32.mxu1 %v4067_v2  ;;  %3748 = vmatpush1.bf16.msra.mxu1 %v4321_v37 }
0x141a   :  { %3750 = vmatprep.subr.bf16.mxu1 %v4352_v63 }
0x141d   :  { %3752 = vmatpush1.bf16.msra.mxu1 %v4324_v39 }
0x141e   :  { %3753 = vmatprep.subr.bf16.mxu1 %v4065_v1 }
0x14eb   :  { %v1445_v26 = vpop.f32.mrb[6].mxu1 }
0x14ec   :  { %3927 = vtanh.f32 %v1445_v26  ;;  %v3537_v27 = vpop.f32.mrb[7].mxu1 }
0x14f6   :  { %v3928_v28 = vpop.eup %3927 }
0x14f7   :  { %1454 = vrot.lane.b32.xlu1 %v3928_v28, %s4068_s2  ;;  %v1450_v12 = vmul.f32 0.5, %v3928_v28 }
0x14f9   :  { %v1451_v29 = vadd.f32 0.5, %v1450_v12 }
0x14fb   :  { %v1452_v32 = vmul.f32 %v1451_v29, %v1288_v20 }
0x1569   :  { %v1455_v30 = vpop.permute.xlu1 %1454 }
0x156a   :  { %v1457_v31 = vmul.f32 %v1455_v30, %v1451_v29 }
0x156c   :  { %1459 = vrot.lane.b32.xlu0 %v1457_v31, %s4069_s25 }
0x15de   :  { %v1460_v15 = vpop.permute.xlu0 %1459 }
0x15df   :  { %v1462_v33 = vadd.f32 %v1460_v15, %v1452_v32 }
0x15e1   :  { %3929 = vtanh.f32 %v1462_v33 }
0x15eb   :  { %v3930_v40 = vpop.eup %3929 }
0x15ec   :  { %1465 = vrot.lane.b32.xlu1 %v3930_v40, %s4068_s2 }
0x165e   :  { %v1466_v41 = vpop.permute.xlu1 %1465 }
0x165f   :  { %v1468_v42 = vmul.f32 %v1466_v41, %v1451_v29 }
0x1661   :  { %1473 = vrot.lane.b32.xlu0 %v1468_v42, %s4069_s25 }
0x16d3   :  { %v1474_v48 = vpop.permute.xlu0 %1473 }
0x16d4   :  { %3547 = vmatmul.mubr.msk.f32.vlgmr.msra.gmra.mrb[8].mxu0 %vm84_vm1, %v1474_v48 }
0x16d5   :  { %3741 = vmatpush3.bf16.msra.mxu0 %v4331_v45  ;;  %3557 = vmatprep.mubr.msk.f32.mxu0 %vm4066_vm0, %v4067_v2 }
0x16d6   :  { %3742 = vmatprep.subr.bf16.mxu0 %v4065_v1 }
0x16d9   :  { %3744 = vmatpush3.bf16.msra.mxu0 %v4335_v49 }
0x16da   :  { %3760 = vmatprep.subr.bf16.mxu0 %v4350_v61 }
0x16dc   :  { %3558 = vmatmul.mubr.msk.f32.vlgmr.msra.gmra.mrb[8].mxu0 %vm84_vm1, %v3211_v50 }
0x16dd   :  { %1918 = vmatprep.mubr.f32.mxu0 %v4067_v2  ;;  %3762 = vmatpush1.bf16.msra.mxu0 %v4321_v37 }
0x16de   :  { %3764 = vmatprep.subr.bf16.mxu0 %v4352_v63 }
0x16e1   :  { %3766 = vmatpush1.bf16.msra.mxu0 %v4324_v39 }
0x16e2   :  { %3774 = vmatprep.subr.bf16.mxu0 %v4350_v61 }
0x17af   :  { %v1616_v51 = vpop.f32.mrb[8].mxu0 }
0x17b0   :  { %3931 = vtanh.f32 %v1616_v51  ;;  %v3559_v52 = vpop.f32.mrb[9].mxu0 }
0x17ba   :  { %v3932_v53 = vpop.eup %3931 }
0x17bb   :  { %1625 = vrot.lane.b32.xlu1 %v3932_v53, %s4068_s2  ;;  %v1621_v54 = vmul.f32 0.5, %v3932_v53 }
0x17bd   :  { %v1622_v55 = vadd.f32 0.5, %v1621_v54 }
0x17bf   :  { %v1623_v17 = vmul.f32 0.0, %v1622_v55 }
0x182d   :  { %v1626_v56 = vpop.permute.xlu1 %1625 }
0x182e   :  { %v1628_v6 = vmul.f32 %v1626_v56, %v1622_v55 }
0x1830   :  { %1630 = vrot.lane.b32.xlu0 %v1628_v6, %s4069_s25 }
0x18a2   :  { %v1631_v57 = vpop.permute.xlu0 %1630 }
0x18a3   :  { %v4347_v9 = vadd.f32 %v1631_v57, %v1623_v17 }
0x18a5   :  { %3933 = vtanh.f32 %v4347_v9 }
0x18af   :  { %v3934_v0 = vpop.eup %3933 }
0x18b0   :  { %1636 = vrot.lane.b32.xlu1 %v3934_v0, %s4068_s2 }
0x1922   :  { %v1637_v4 = vpop.permute.xlu1 %1636 }
0x1923   :  { %v1639_v5 = vmul.f32 %v1637_v4, %v1622_v55 }
0x1925   :  { %1641 = vrot.lane.b32.xlu0 %v1639_v5, %s4069_s25 }
0x1997   :  { %v1642_v7 = vpop.permute.xlu0 %1641 }
0x1998   :  { %3214 = vmatmul.mubr.msk.f32.vlgmr.msra.gmra.mrb[8].mxu1 %vm84_vm1, %v1642_v7 }
0x1999   :  { %3755 = vmatpush3.bf16.msra.mxu1 %v4331_v45  ;;  %3568 = vmatprep.mubr.msk.f32.mxu1 %vm4066_vm0, %v4067_v2 }
0x199a   :  { %3756 = vmatprep.subr.bf16.mxu1 %v4065_v1 }
0x199d   :  { %3758 = vmatpush3.bf16.msra.mxu1 %v4335_v49 }
0x199e   :  { %3767 = vmatprep.subr.bf16.mxu1 %v4065_v1 }
0x1a6b   :  { %v1711_v19 = vpop.f32.mrb[8].mxu1 }
0x1a6c   :  { %v1713_v20 = vpop.f32.mrb[9].mxu1 }
0x1a6d   :  { %v1720_v21 = vadd.f32 %v4374_v14, %v1713_v20 }
0x1a6f   :  { %v1728_v22 = vrot.slane %v1720_v21, %v4376_v18  ;;  %v1750_v23 = vsel %vm1749_vm11, %v1720_v21, -inf }
0x1a70   :  { %1751 = vmax.xlane.f32.xlu1 %v1750_v23 }
0x1a71   :  { %v1729_v24 = vcombine.high %v1728_v22, %v1728_v22  ;;  %v1736_v25 = vrot.slane %v1728_v22, %v4376_v18 }
0x1a73   :  { %v1743_v16 = vrot.slane %v1729_v24, %v4376_v18  ;;  %1747 = vst.msk [vmem:[#allocation8] sm:$0x1] %vm1746_vm12, %v1736_v25 }
0x1a75   :  { %1748 = vst.msk [vmem:[#allocation8 + $0x8] sm:$0x1] %vm1746_vm12, %v1743_v16 }
0x1afd   :  { %v1752_v3 = vpop.xlane.xlu1 %1751 }
0x1afe   :  { %vm1753_vm13 = vcmp.eq.f32.partialorder %v1720_v21, %v1752_v3 }
0x1aff   :  { %v3216_v26 = vsel %vm1753_vm13, 1.0, %v4067_v2 }
0x1b00   :  { %3569 = vmatmul.mubr.msk.f32.vlgmr.msra.gmra.mrb[10].mxu1 %vm84_vm1, %v3216_v26 }
0x1b01   :  { %3769 = vmatpush3.bf16.msra.mxu1 %v4331_v45  ;;  %3579 = vmatprep.mubr.msk.f32.mxu1 %vm4066_vm0, %v4067_v2 }
0x1b02   :  { %3770 = vmatprep.subr.bf16.mxu1 %v4065_v1 }
0x1b05   :  { %3772 = vmatpush3.bf16.msra.mxu1 %v4335_v49 }
0x1b06   :  { %3781 = vmatprep.subr.bf16.mxu1 %v4065_v1 }
0x1bd3   :  { %v1825_v27 = vpop.f32.mrb[10].mxu1 }
0x1bd4   :  { %v1826_v28 = vadd.f32 %v1825_v27, %v1711_v19  ;;  %v3570_v12 = vpop.f32.mrb[11].mxu1 }
0x1bd6   :  { %3935 = vtanh.f32 %v1826_v28 }
0x1be0   :  { %v3936_v29 = vpop.eup %3935 }
0x1be1   :  { %1834 = vrot.lane.b32.xlu0 %v3936_v29, %s4068_s2  ;;  %v1830_v30 = vmul.f32 0.5, %v3936_v29 }
0x1be3   :  { %v1831_v31 = vadd.f32 0.5, %v1830_v30 }
0x1be5   :  { %v1832_v33 = vmul.f32 %v1831_v31, %v4347_v9 }
0x1c53   :  { %v1835_v32 = vpop.permute.xlu0 %1834 }
0x1c54   :  { %v1837_v15 = vmul.f32 %v1835_v32, %v1831_v31 }
0x1c56   :  { %1839 = vrot.lane.b32.xlu0 %v1837_v15, %s4069_s25 }
0x1cc8   :  { %v1840_v34 = vpop.permute.xlu0 %1839 }
0x1cc9   :  { %v1842_v35 = vadd.f32 %v1840_v34, %v1832_v33 }
0x1ccb   :  { %3937 = vtanh.f32 %v1842_v35 }
0x1cd5   :  { %v3938_v36 = vpop.eup %3937 }
0x1cd6   :  { %1845 = vrot.lane.b32.xlu0 %v3938_v36, %s4068_s2 }
0x1d48   :  { %v1846_v38 = vpop.permute.xlu0 %1845 }
0x1d49   :  { %v1848_v40 = vmul.f32 %v1846_v38, %v1831_v31 }
0x1d4b   :  { %1850 = vrot.lane.b32.xlu0 %v1848_v40, %s4069_s25 }
0x1dbd   :  { %v1851_v41 = vpop.permute.xlu0 %1850 }
0x1dbe   :  { %3218 = vmatmul.mubr.msk.f32.vlgmr.msra.gmra.mrb[10].mxu0 %vm84_vm1, %v1851_v41 }
0x1dbf   :  { %3776 = vmatpush1.bf16.msra.mxu0 %v4321_v37  ;;  %2121 = vmatprep.mubr.f32.mxu0 %v4067_v2 }
0x1dc0   :  { %3778 = vmatprep.subr.bf16.mxu0 %v4352_v63 }
0x1dc3   :  { %3780 = vmatpush1.bf16.msra.mxu0 %v4324_v39 }
0x1dc4   :  { %3788 = vmatprep.subr.bf16.mxu0 %v4350_v61 }
0x1e91   :  { %v1920_v42 = vpop.f32.mrb[10].mxu0 }
0x1e92   :  { %v1922_v43 = vpop.f32.mrb[11].mxu0 }
0x1e93   :  { %v1925_v44 = vadd.f32 %v4374_v14, %v1922_v43 }
0x1e95   :  { %v1933_v46 = vrot.slane %v1925_v44, %v4376_v18  ;;  %v1953_v47 = vsel %vm1749_vm11, %v1925_v44, -inf }
0x1e96   :  { %1954 = vmax.xlane.f32.xlu0 %v1953_v47 }
0x1e97   :  { %v1934_v48 = vcombine.high %v1933_v46, %v1933_v46  ;;  %v1941_v50 = vrot.slane %v1933_v46, %v4376_v18 }
0x1e99   :  { %v1948_v51 = vrot.slane %v1934_v48, %v4376_v18  ;;  %1951 = vst.msk [vmem:[#allocation8 + $0x1] sm:$0x1] %vm1746_vm12, %v1941_v50 }
0x1e9b   :  { %1952 = vst.msk [vmem:[#allocation8 + $0x9] sm:$0x1] %vm1746_vm12, %v1948_v51 }
0x1f23   :  { %v1955_v52 = vpop.xlane.xlu0 %1954 }
0x1f24   :  { %vm1956_vm14 = vcmp.eq.f32.partialorder %v1925_v44, %v1955_v52 }
0x1f25   :  { %v3219_v53 = vsel %vm1956_vm14, 1.0, %v4067_v2 }
0x1f26   :  { %3580 = vmatmul.mubr.msk.f32.vlgmr.msra.gmra.mrb[12].mxu1 %vm84_vm1, %v3219_v53 }
0x1f27   :  { %3783 = vmatpush3.bf16.msra.mxu1 %v4331_v45  ;;  %3590 = vmatprep.mubr.msk.f32.mxu1 %vm4066_vm0, %v4067_v2 }
0x1f28   :  { %3784 = vmatprep.subr.bf16.mxu1 %v4065_v1 }
0x1f2b   :  { %3786 = vmatpush3.bf16.msra.mxu1 %v4335_v49 }
0x1f2c   :  { %3795 = vmatprep.subr.bf16.mxu1 %v4065_v1 }
0x1ff9   :  { %v2028_v54 = vpop.f32.mrb[12].mxu1 }
0x1ffa   :  { %v2029_v55 = vadd.f32 %v2028_v54, %v1920_v42  ;;  %v3581_v56 = vpop.f32.mrb[13].mxu1 }
0x1ffc   :  { %3939 = vtanh.f32 %v2029_v55 }
0x2006   :  { %v3940_v6 = vpop.eup %3939 }
0x2007   :  { %2037 = vrot.lane.b32.xlu1 %v3940_v6, %s4068_s2  ;;  %v2033_v17 = vmul.f32 0.5, %v3940_v6 }
0x2009   :  { %v2034_v57 = vadd.f32 0.5, %v2033_v17 }
0x200b   :  { %v2035_v59 = vmul.f32 %v2034_v57, %v1842_v35 }
0x2079   :  { %v2038_v9 = vpop.permute.xlu1 %2037 }
0x207a   :  { %v2040_v58 = vmul.f32 %v2038_v9, %v2034_v57 }
0x207c   :  { %2042 = vrot.lane.b32.xlu0 %v2040_v58, %s4069_s25 }
0x20ee   :  { %v2043_v60 = vpop.permute.xlu0 %2042 }
0x20ef   :  { %v2045_v62 = vadd.f32 %v2043_v60, %v2035_v59 }
0x20f1   :  { %3941 = vtanh.f32 %v2045_v62 }
0x20fb   :  { %v3942_v0 = vpop.eup %3941 }
0x20fc   :  { %2048 = vrot.lane.b32.xlu1 %v3942_v0, %s4068_s2 }
0x216e   :  { %v2049_v4 = vpop.permute.xlu1 %2048 }
0x216f   :  { %v2051_v5 = vmul.f32 %v2049_v4, %v2034_v57 }
0x2171   :  { %2053 = vrot.lane.b32.xlu1 %v2051_v5, %s4069_s25 }
0x21e3   :  { %v2054_v7 = vpop.permute.xlu1 %2053 }
0x21e4   :  { %3221 = vmatmul.mubr.msk.f32.vlgmr.msra.gmra.mrb[12].mxu0 %vm84_vm1, %v2054_v7 }
0x21e5   :  { %3790 = vmatpush1.bf16.msra.mxu0 %v4321_v37  ;;  %2324 = vmatprep.mubr.f32.mxu0 %v4067_v2 }
0x21e6   :  { %3792 = vmatprep.subr.bf16.mxu0 %v4352_v63 }
0x21e9   :  { %3794 = vmatpush1.bf16.msra.mxu0 %v4324_v39 }
0x21ea   :  { %3802 = vmatprep.subr.bf16.mxu0 %v4350_v61 }
0x22b7   :  { %v2123_v8 = vpop.f32.mrb[12].mxu0 }
0x22b8   :  { %v2125_v10 = vpop.f32.mrb[13].mxu0 }
0x22b9   :  { %v2128_v11 = vadd.f32 %v4374_v14, %v2125_v10 }
0x22bb   :  { %v2136_v13 = vrot.slane %v2128_v11, %v4376_v18  ;;  %v2156_v19 = vsel %vm1749_vm11, %v2128_v11, -inf }
0x22bc   :  { %2157 = vmax.xlane.f32.xlu1 %v2156_v19 }
0x22bd   :  { %v2137_v20 = vcombine.high %v2136_v13, %v2136_v13  ;;  %v2144_v21 = vrot.slane %v2136_v13, %v4376_v18 }
0x22bf   :  { %v2151_v22 = vrot.slane %v2137_v20, %v4376_v18  ;;  %2154 = vst.msk [vmem:[#allocation8 + $0x2] sm:$0x1] %vm1746_vm12, %v2144_v21 }
0x22c1   :  { %2155 = vst.msk [vmem:[#allocation8 + $0xa] sm:$0x1] %vm1746_vm12, %v2151_v22 }
0x2349   :  { %v2158_v23 = vpop.xlane.xlu1 %2157 }
0x234a   :  { %vm2159_vm15 = vcmp.eq.f32.partialorder %v2128_v11, %v2158_v23 }
0x234b   :  { %v3222_v24 = vsel %vm2159_vm15, 1.0, %v4067_v2 }
0x234c   :  { %3591 = vmatmul.mubr.msk.f32.vlgmr.msra.gmra.mrb[14].mxu1 %vm84_vm1, %v3222_v24 }
0x234d   :  { %3797 = vmatpush3.bf16.msra.mxu1 %v4331_v45  ;;  %3601 = vmatprep.mubr.msk.f32.mxu1 %vm4066_vm0, %v4067_v2 }
0x234e   :  { %3798 = vmatprep.subr.bf16.mxu1 %v4065_v1 }
0x2351   :  { %3800 = vmatpush3.bf16.msra.mxu1 %v4335_v49 }
0x2352   :  { %3809 = vmatprep.subr.bf16.mxu1 %v4065_v1 }
0x241f   :  { %v2231_v25 = vpop.f32.mrb[14].mxu1 }
0x2420   :  { %v2232_v16 = vadd.f32 %v2231_v25, %v2123_v8  ;;  %v3592_v3 = vpop.f32.mrb[15].mxu1 }
0x2422   :  { %3943 = vtanh.f32 %v2232_v16 }
0x242c   :  { %v3944_v26 = vpop.eup %3943 }
0x242d   :  { %2240 = vrot.lane.b32.xlu0 %v3944_v26, %s4068_s2  ;;  %v2236_v27 = vmul.f32 0.5, %v3944_v26 }
0x242f   :  { %v2237_v28 = vadd.f32 0.5, %v2236_v27 }
0x2431   :  { %v2238_v30 = vmul.f32 %v2237_v28, %v2045_v62 }
0x249f   :  { %v2241_v12 = vpop.permute.xlu0 %2240 }
0x24a0   :  { %v2243_v29 = vmul.f32 %v2241_v12, %v2237_v28 }
0x24a2   :  { %2245 = vrot.lane.b32.xlu0 %v2243_v29, %s4069_s25 }
0x2514   :  { %v2246_v31 = vpop.permute.xlu0 %2245 }
0x2515   :  { %v2248_v32 = vadd.f32 %v2246_v31, %v2238_v30 }
0x2517   :  { %3945 = vtanh.f32 %v2248_v32 }
0x2521   :  { %v3946_v15 = vpop.eup %3945 }
0x2522   :  { %2251 = vrot.lane.b32.xlu0 %v3946_v15, %s4068_s2 }
0x2594   :  { %v2252_v33 = vpop.permute.xlu0 %2251 }
0x2595   :  { %v2254_v34 = vmul.f32 %v2252_v33, %v2237_v28 }
0x2597   :  { %2256 = vrot.lane.b32.xlu0 %v2254_v34, %s4069_s25 }
0x2609   :  { %v2257_v35 = vpop.permute.xlu0 %2256 }
0x260a   :  { %3224 = vmatmul.mubr.msk.f32.vlgmr.msra.gmra.mrb[14].mxu0 %vm84_vm1, %v2257_v35 }
0x260b   :  { %3804 = vmatpush1.bf16.msra.mxu0 %v4321_v37  ;;  %2527 = vmatprep.mubr.f32.mxu0 %v4067_v2 }
0x260c   :  { %3806 = vmatprep.subr.bf16.mxu0 %v4352_v63 }
0x260f   :  { %3808 = vmatpush1.bf16.msra.mxu0 %v4324_v39 }
0x2610   :  { %3816 = vmatprep.subr.bf16.mxu0 %v4350_v61 }
0x26dd   :  { %v2326_v36 = vpop.f32.mrb[14].mxu0 }
0x26de   :  { %v2328_v38 = vpop.f32.mrb[15].mxu0 }
0x26df   :  { %v2331_v40 = vadd.f32 %v4374_v14, %v2328_v38 }
0x26e1   :  { %v2339_v41 = vrot.slane %v2331_v40, %v4376_v18  ;;  %v2359_v42 = vsel %vm1749_vm11, %v2331_v40, -inf }
0x26e2   :  { %2360 = vmax.xlane.f32.xlu0 %v2359_v42 }
0x26e3   :  { %v2340_v43 = vcombine.high %v2339_v41, %v2339_v41  ;;  %v2347_v44 = vrot.slane %v2339_v41, %v4376_v18 }
0x26e5   :  { %v2354_v46 = vrot.slane %v2340_v43, %v4376_v18  ;;  %2357 = vst.msk [vmem:[#allocation8 + $0x3] sm:$0x1] %vm1746_vm12, %v2347_v44 }
0x26e7   :  { %2358 = vst.msk [vmem:[#allocation8 + $0xb] sm:$0x1] %vm1746_vm12, %v2354_v46 }
0x276f   :  { %v2361_v47 = vpop.xlane.xlu0 %2360 }
0x2770   :  { %vm2362_vm2 = vcmp.eq.f32.partialorder %v2331_v40, %v2361_v47 }
0x2771   :  { %v3225_v48 = vsel %vm2362_vm2, 1.0, %v4067_v2 }
0x2772   :  { %3602 = vmatmul.mubr.msk.f32.vlgmr.msra.gmra.mrb[16].mxu1 %vm84_vm1, %v3225_v48 }
0x2773   :  { %3811 = vmatpush3.bf16.msra.mxu1 %v4331_v45  ;;  %3612 = vmatprep.mubr.msk.f32.mxu1 %vm4066_vm0, %v4067_v2 }
0x2774   :  { %3812 = vmatprep.subr.bf16.mxu1 %v4065_v1 }
0x2777   :  { %3814 = vmatpush3.bf16.msra.mxu1 %v4335_v49 }
0x2778   :  { %3823 = vmatprep.subr.bf16.mxu1 %v4065_v1 }
0x2845   :  { %v2434_v50 = vpop.f32.mrb[16].mxu1 }
0x2846   :  { %v2435_v51 = vadd.f32 %v2434_v50, %v2326_v36  ;;  %v3603_v52 = vpop.f32.mrb[17].mxu1 }
0x2848   :  { %3947 = vtanh.f32 %v2435_v51 }
0x2852   :  { %v3948_v53 = vpop.eup %3947 }
0x2853   :  { %2443 = vrot.lane.b32.xlu1 %v3948_v53, %s4068_s2  ;;  %v2439_v54 = vmul.f32 0.5, %v3948_v53 }
0x2855   :  { %v2440_v55 = vadd.f32 0.5, %v2439_v54 }
0x2857   :  { %v2441_v17 = vmul.f32 %v2440_v55, %v2248_v32 }
0x28c5   :  { %v2444_v56 = vpop.permute.xlu1 %2443 }
0x28c6   :  { %v2446_v6 = vmul.f32 %v2444_v56, %v2440_v55 }
0x28c8   :  { %2448 = vrot.lane.b32.xlu1 %v2446_v6, %s4069_s25 }
0x293a   :  { %v2449_v57 = vpop.permute.xlu1 %2448 }
0x293b   :  { %v2451_v9 = vadd.f32 %v2449_v57, %v2441_v17 }
0x293d   :  { %3949 = vtanh.f32 %v2451_v9 }
0x2947   :  { %v3950_v58 = vpop.eup %3949 }
0x2948   :  { %2454 = vrot.lane.b32.xlu1 %v3950_v58, %s4068_s2 }
0x29ba   :  { %v2455_v59 = vpop.permute.xlu1 %2454 }
0x29bb   :  { %v2457_v60 = vmul.f32 %v2455_v59, %v2440_v55 }
0x29bd   :  { %2459 = vrot.lane.b32.xlu0 %v2457_v60, %s4069_s25 }
0x2a2f   :  { %v2460_v62 = vpop.permute.xlu0 %2459 }
0x2a30   :  { %3227 = vmatmul.mubr.msk.f32.vlgmr.msra.gmra.mrb[16].mxu0 %vm84_vm1, %v2460_v62 }
0x2a31   :  { %3818 = vmatpush1.bf16.msra.mxu0 %v4321_v37  ;;  %2730 = vmatprep.mubr.f32.mxu0 %v4067_v2 }
0x2a32   :  { %3820 = vmatprep.subr.bf16.mxu0 %v4352_v63 }
0x2a35   :  { %3822 = vmatpush1.bf16.msra.mxu0 %v4324_v39 }
0x2a36   :  { %3830 = vmatprep.subr.bf16.mxu0 %v4350_v61 }
0x2b03   :  { %v2529_v0 = vpop.f32.mrb[16].mxu0 }
0x2b04   :  { %v2531_v4 = vpop.f32.mrb[17].mxu0 }
0x2b05   :  { %v2534_v5 = vadd.f32 %v4374_v14, %v2531_v4 }
0x2b07   :  { %v2542_v7 = vrot.slane %v2534_v5, %v4376_v18  ;;  %v2562_v8 = vsel %vm1749_vm11, %v2534_v5, -inf }
0x2b08   :  { %2563 = vmax.xlane.f32.xlu1 %v2562_v8 }
0x2b09   :  { %v2543_v10 = vcombine.high %v2542_v7, %v2542_v7  ;;  %v2550_v11 = vrot.slane %v2542_v7, %v4376_v18 }
0x2b0b   :  { %v2557_v13 = vrot.slane %v2543_v10, %v4376_v18  ;;  %2560 = vst.msk [vmem:[#allocation8 + $0x4] sm:$0x1] %vm1746_vm12, %v2550_v11 }
0x2b0d   :  { %2561 = vst.msk [vmem:[#allocation8 + $0xc] sm:$0x1] %vm1746_vm12, %v2557_v13 }
0x2b95   :  { %v2564_v19 = vpop.xlane.xlu1 %2563 }
0x2b96   :  { %vm2565_vm3 = vcmp.eq.f32.partialorder %v2534_v5, %v2564_v19 }
0x2b97   :  { %v3228_v20 = vsel %vm2565_vm3, 1.0, %v4067_v2 }
0x2b98   :  { %3613 = vmatmul.mubr.msk.f32.vlgmr.msra.gmra.mrb[18].mxu1 %vm84_vm1, %v3228_v20 }
0x2b99   :  { %3825 = vmatpush3.bf16.msra.mxu1 %v4331_v45  ;;  %3623 = vmatprep.mubr.msk.f32.mxu1 %vm4066_vm0, %v4067_v2 }
0x2b9a   :  { %3826 = vmatprep.subr.bf16.mxu1 %v4065_v1 }
0x2b9d   :  { %3828 = vmatpush3.bf16.msra.mxu1 %v4335_v49 }
0x2b9e   :  { %3837 = vmatprep.subr.bf16.mxu1 %v4065_v1 }
0x2c6b   :  { %v2637_v21 = vpop.f32.mrb[18].mxu1 }
0x2c6c   :  { %v2638_v22 = vadd.f32 %v2637_v21, %v2529_v0  ;;  %v3614_v23 = vpop.f32.mrb[19].mxu1 }
0x2c6e   :  { %3951 = vtanh.f32 %v2638_v22 }
0x2c78   :  { %v3952_v24 = vpop.eup %3951 }
0x2c79   :  { %2646 = vrot.lane.b32.xlu0 %v3952_v24, %s4068_s2  ;;  %v2642_v25 = vmul.f32 0.5, %v3952_v24 }
0x2c7b   :  { %v2643_v16 = vadd.f32 0.5, %v2642_v25 }
0x2c7d   :  { %v2644_v27 = vmul.f32 %v2643_v16, %v2451_v9 }
0x2ceb   :  { %v2647_v3 = vpop.permute.xlu0 %2646 }
0x2cec   :  { %v2649_v26 = vmul.f32 %v2647_v3, %v2643_v16 }
0x2cee   :  { %2651 = vrot.lane.b32.xlu0 %v2649_v26, %s4069_s25 }
0x2d60   :  { %v2652_v28 = vpop.permute.xlu0 %2651 }
0x2d61   :  { %v2654_v12 = vadd.f32 %v2652_v28, %v2644_v27 }
0x2d63   :  { %3953 = vtanh.f32 %v2654_v12 }
0x2d6d   :  { %v3954_v29 = vpop.eup %3953 }
0x2d6e   :  { %2657 = vrot.lane.b32.xlu0 %v3954_v29, %s4068_s2 }
0x2de0   :  { %v2658_v30 = vpop.permute.xlu0 %2657 }
0x2de1   :  { %v2660_v31 = vmul.f32 %v2658_v30, %v2643_v16 }
0x2de3   :  { %2662 = vrot.lane.b32.xlu0 %v2660_v31, %s4069_s25 }
0x2e55   :  { %v2663_v32 = vpop.permute.xlu0 %2662 }
0x2e56   :  { %3230 = vmatmul.mubr.msk.f32.vlgmr.msra.gmra.mrb[18].mxu0 %vm84_vm1, %v2663_v32 }
0x2e57   :  { %3832 = vmatpush1.bf16.msra.mxu0 %v4321_v37  ;;  %2933 = vmatprep.mubr.f32.mxu0 %v4067_v2 }
0x2e58   :  { %3834 = vmatprep.subr.bf16.mxu0 %v4352_v63 }
0x2e5b   :  { %3836 = vmatpush1.bf16.msra.mxu0 %v4324_v39 }
0x2e5c   :  { %3844 = vmatprep.subr.bf16.mxu0 %v4350_v61 }
0x2f29   :  { %v2732_v15 = vpop.f32.mrb[18].mxu0 }
0x2f2a   :  { %v2734_v33 = vpop.f32.mrb[19].mxu0 }
0x2f2b   :  { %v2737_v34 = vadd.f32 %v4374_v14, %v2734_v33 }
0x2f2d   :  { %v2745_v35 = vrot.slane %v2737_v34, %v4376_v18  ;;  %v2765_v36 = vsel %vm1749_vm11, %v2737_v34, -inf }
0x2f2e   :  { %2766 = vmax.xlane.f32.xlu0 %v2765_v36 }
0x2f2f   :  { %v2746_v38 = vcombine.high %v2745_v35, %v2745_v35  ;;  %v2753_v40 = vrot.slane %v2745_v35, %v4376_v18 }
0x2f31   :  { %v2760_v41 = vrot.slane %v2746_v38, %v4376_v18  ;;  %2763 = vst.msk [vmem:[#allocation8 + $0x5] sm:$0x1] %vm1746_vm12, %v2753_v40 }
0x2f33   :  { %2764 = vst.msk [vmem:[#allocation8 + $0xd] sm:$0x1] %vm1746_vm12, %v2760_v41 }
0x2fbb   :  { %v2767_v42 = vpop.xlane.xlu0 %2766 }
0x2fbc   :  { %vm2768_vm4 = vcmp.eq.f32.partialorder %v2737_v34, %v2767_v42 }
0x2fbd   :  { %v3231_v61 = vsel %vm2768_vm4, 1.0, %v4067_v2 }
0x2fbe   :  { %3624 = vmatmul.mubr.msk.f32.vlgmr.msra.gmra.mrb[20].mxu1 %vm84_vm1, %v3231_v61 }
0x2fbf   :  { %3839 = vmatpush3.bf16.msra.mxu1 %v4331_v45  ;;  %3634 = vmatprep.mubr.msk.f32.mxu1 %vm4066_vm0, %v4067_v2 }
0x2fc0   :  { %3840 = vmatprep.subr.bf16.mxu1 %v4065_v1 }
0x2fc3   :  { %3842 = vmatpush3.bf16.msra.mxu1 %v4335_v49 }
0x3091   :  { %v2840_v43 = vpop.f32.mrb[20].mxu1 }
0x3092   :  { %v2841_v44 = vadd.f32 %v2840_v43, %v2732_v15  ;;  %v3625_v46 = vpop.f32.mrb[21].mxu1 }
0x3094   :  { %3955 = vtanh.f32 %v2841_v44 }
0x309e   :  { %v3956_v47 = vpop.eup %3955 }
0x309f   :  { %2849 = vrot.lane.b32.xlu1 %v3956_v47, %s4068_s2  ;;  %v2845_v48 = vmul.f32 0.5, %v3956_v47 }
0x30a1   :  { %v2846_v50 = vadd.f32 0.5, %v2845_v48 }
0x30a3   :  { %v2847_v45 = vmul.f32 %v2846_v50, %v2654_v12 }
0x3111   :  { %v2850_v51 = vpop.permute.xlu1 %2849 }
0x3112   :  { %v2852_v52 = vmul.f32 %v2850_v51, %v2846_v50 }
0x3114   :  { %2854 = vrot.lane.b32.xlu1 %v2852_v52, %s4069_s25 }
0x3186   :  { %v2855_v53 = vpop.permute.xlu1 %2854 }
0x3187   :  { %v2857_v54 = vadd.f32 %v2855_v53, %v2847_v45 }
0x3189   :  { %3957 = vtanh.f32 %v2857_v54 }
0x3193   :  { %v3958_v1 = vpop.eup %3957 }
0x3194   :  { %2860 = vrot.lane.b32.xlu1 %v3958_v1, %s4068_s2 }
0x3206   :  { %v2861_v49 = vpop.permute.xlu1 %2860 }
0x3207   :  { %v2863_v55 = vmul.f32 %v2861_v49, %v2846_v50 }
0x3209   :  { %2865 = vrot.lane.b32.xlu1 %v2863_v55, %s4069_s25 }
0x327b   :  { %v2866_v56 = vpop.permute.xlu1 %2865 }
0x327c   :  { %3233 = vmatmul.mubr.msk.f32.vlgmr.msra.gmra.mrb[20].mxu0 %vm84_vm1, %v2866_v56 }
0x327d   :  { %3846 = vmatpush1.bf16.msra.mxu0 %v4321_v37  ;;  %3136 = vmatprep.mubr.f32.mxu0 %v4067_v2 }
0x327e   :  { %3848 = vmatprep.subr.bf16.mxu0 %v4352_v63 }
0x3281   :  { %3850 = vmatpush1.bf16.msra.mxu0 %v4324_v39 }
0x334f   :  { %v2935_v6 = vpop.f32.mrb[20].mxu0 }
0x3350   :  { %v2937_v17 = vpop.f32.mrb[21].mxu0 }
0x3351   :  { %v2940_v57 = vadd.f32 %v4374_v14, %v2937_v17 }
0x3353   :  { %v2948_v9 = vrot.slane %v2940_v57, %v4376_v18  ;;  %v2968_v58 = vsel %vm1749_vm11, %v2940_v57, -inf }
0x3354   :  { %2969 = vmax.xlane.f32.xlu1 %v2968_v58 }
0x3355   :  { %v2949_v59 = vcombine.high %v2948_v9, %v2948_v9  ;;  %v2956_v60 = vrot.slane %v2948_v9, %v4376_v18 }
0x3357   :  { %v2963_v37 = vrot.slane %v2949_v59, %v4376_v18  ;;  %2966 = vst.msk [vmem:[#allocation8 + $0x6] sm:$0x1] %vm1746_vm12, %v2956_v60 }
0x3359   :  { %2967 = vst.msk [vmem:[#allocation8 + $0xe] sm:$0x1] %vm1746_vm12, %v2963_v37 }
0x33e1   :  { %v2970_v63 = vpop.xlane.xlu1 %2969 }
0x33e2   :  { %vm2971_vm0 = vcmp.eq.f32.partialorder %v2940_v57, %v2970_v63 }
0x33e3   :  { %v3234_v39 = vsel %vm2971_vm0, 1.0, %v4067_v2 }
0x33e4   :  { %3635 = vmatmul.mubr.msk.f32.vlgmr.msra.gmra.mrb[22].mxu1 %vm84_vm1, %v3234_v39 }
0x34b7   :  { %v3043_v62 = vpop.f32.mrb[22].mxu1 }
0x34b8   :  { %v3044_v0 = vadd.f32 %v3043_v62, %v2935_v6  ;;  %v3636_v4 = vpop.f32.mrb[23].mxu1 }
0x34ba   :  { %3959 = vtanh.f32 %v3044_v0 }
0x34c4   :  { %v3960_v5 = vpop.eup %3959 }
0x34c5   :  { %3052 = vrot.lane.b32.xlu0 %v3960_v5, %s4068_s2  ;;  %v3048_v7 = vmul.f32 0.5, %v3960_v5 }
0x34c7   :  { %v3049_v8 = vadd.f32 0.5, %v3048_v7 }
0x34c9   :  { %v3050_v13 = vmul.f32 %v3049_v8, %v2857_v54 }
0x3537   :  { %v3053_v10 = vpop.permute.xlu0 %3052 }
0x3538   :  { %v3055_v11 = vmul.f32 %v3053_v10, %v3049_v8 }
0x353a   :  { %3057 = vrot.lane.b32.xlu0 %v3055_v11, %s4069_s25 }
0x35ac   :  { %v3058_v19 = vpop.permute.xlu0 %3057 }
0x35ad   :  { %v3060_v20 = vadd.f32 %v3058_v19, %v3050_v13 }
0x35af   :  { %3961 = vtanh.f32 %v3060_v20 }
0x35b9   :  { %v3962_v2 = vpop.eup %3961 }
0x35ba   :  { %3063 = vrot.lane.b32.xlu0 %v3962_v2, %s4068_s2 }
0x362c   :  { %v3064_v21 = vpop.permute.xlu0 %3063 }
0x362d   :  { %v3066_v22 = vmul.f32 %v3064_v21, %v3049_v8 }
0x362f   :  { %3068 = vrot.lane.b32.xlu0 %v3066_v22, %s4069_s25 }
0x36a1   :  { %v3069_v23 = vpop.permute.xlu0 %3068 }
0x36a2   :  { %3236 = vmatmul.mubr.msk.f32.vlgmr.msra.gmra.mrb[22].mxu0 %vm84_vm1, %v3069_v23 }
0x3775   :  { %v3138_v24 = vpop.f32.mrb[22].mxu0 }
0x3776   :  { %v3139_v25 = vpop.f32.mrb[23].mxu0 }
0x3777   :  { %v3142_v16 = vadd.f32 %v4374_v14, %v3139_v25 }
0x3779   :  { %v3150_v3 = vrot.slane %v3142_v16, %v4376_v18 }
0x377b   :  { %v3151_v26 = vcombine.high %v3150_v3, %v3150_v3  ;;  %v3158_v27 = vrot.slane %v3150_v3, %v4376_v18 }
0x377d   :  { %v3165_v28 = vrot.slane %v3151_v26, %v4376_v18  ;;  %3168 = vst.msk [vmem:[#allocation8 + $0x7] sm:$0x1] %vm1746_vm12, %v3158_v27 }
0x377f   :  { %3169 = vst.msk [vmem:[#allocation8 + $0xf] sm:$0x1] %vm1746_vm12, %v3165_v28 }
0x3780   :  { %4040 = shalt.err (!%p4037_p0)
}
0x3781   :  { %s4041_s4 = scalar_lea.hbm %s4565_s3, 256 }
0x3782   :  { %p4042_p1 = scmp.ne.s32.totalorder %s4565_s3, %s4041_s4  ;;  %p4045_p2 = scmp.lt.u32.totalorder %s4041_s4, %s4565_s3 }
0x3784   :  { %p4047_p3 = pnand %p4045_p2, %p4042_p1 }
0x3786   :  { %4050 = shalt.err (!%p4047_p3)
}
0x3787   :  { %3181 = dma.vmem_to_hbm [thread:$0]  %s3176_s27, 256, %s4565_s3, [#allocation4], %s4058_s22, %s4058_s22, %s4059_s23  }
0x3788   :  { %4055 = dma.done.wait [#allocation4], 256  }
0x3789   :  { %4056 = vsyncadd [#allocation4], 4294967040 }
0x378a   :  { %3185 = vsyncpa [#allocation3], 1 }
0x378b   :  { %3186 = vsyncpa [#allocation6], 1 }
0x378c   :  { %3187 = vsyncpa [#allocation4], 1 }

</bundles_post_ra>
